<compile_context>
chip_gen: v7x
topology: tpu7x:2x2x1
jax: 0.10.0
libtpu: 0.0.40
codegen_flags: <defaults>
</compile_context>

<pallas_src>
import functools
import numpy as np
import jax
import jax.numpy as jnp
from jax.experimental import pallas as pl
from jax.experimental.pallas import tpu as pltpu


def _full_spec(shape):
    nd = len(shape)
    return pl.BlockSpec(shape, lambda i, _nd=nd: (0,) * _nd)


# ---------------------------------------------------------------------------
# Fused kernel: L x (GATEConv + tanh)  ->  JK(max)  ->  4 pools  ->  lin1/lin2
# ---------------------------------------------------------------------------
def _gate_net_kernel(x_ref, mask_ref, ea_ref,
                     wp0_ref, wps_ref, we_ref, bb_ref,
                     pool_ref, gate_ref, tw_ref, tb_ref,
                     o_ref, *, num_layers, num_groups, hidden, num_edge_attr,
                     negative_slope):
    L, G, H, A = num_layers, num_groups, hidden, num_edge_attr
    NEG = jnp.float32(-1e30)

    add_mask = mask_ref[...]                 # (N, N) f32 additive softmax mask, reused per layer
    x = x_ref[...]                           # (N, Fin) f32

    jk = None
    for l in range(L):                       # static unrolled layer loop
        wp = wp0_ref[...] if l == 0 else wps_ref[l - 1]          # (Fin, H+2) bf16 fused weights
        # one MXU matmul gives lin_l(x), alpha_l and alpha_r
        xproj = jnp.dot(x.astype(jnp.bfloat16), wp, preferred_element_type=jnp.float32)
        xl = xproj[:, :H]                                        # (N, H)
        al = xproj[:, H:H + 1]                                   # (N, 1) = sum(xl * att_l)
        ar = xproj[:, H + 1:H + 2]                               # (N, 1) = sum(xl * att_r)

        # logits[i, j] = alpha_r[target i] + alpha_l[source j]
        logits = ar + al.T
        z = jnp.maximum(logits, negative_slope * logits)         # leaky_relu (single VPU op)
        zm = z + add_mask
        ez = jnp.exp(zm - jnp.max(zm, axis=1, keepdims=True))    # masked entries underflow to 0
        alpha = ez * pl.reciprocal(jnp.sum(ez, axis=1, keepdims=True), approx=True)

        a_bf = alpha.astype(jnp.bfloat16)
        x_agg = jnp.dot(a_bf, xl.astype(jnp.bfloat16),
                        preferred_element_type=jnp.float32)      # (N, H)

        # edge messages as ONE MXU contraction:
        #   P[i, a*N+j] = alpha[i, j] * ea[a, i, j];  e_acc = P @ We_exp  (We_exp[a*N+j] = W_e[a])
        a_rep = jnp.concatenate([a_bf] * A, axis=1)              # (N, A*N) bf16
        p_msg = a_rep * ea_ref[...]                              # ea read at its single use per layer
        e_acc = jnp.dot(p_msg, we_ref[l], preferred_element_type=jnp.float32)   # (N, H)

        # rows of alpha sum to 1 (self loops), so b_e factors out; bb = b_e + conv bias.
        x = jnp.tanh(x_agg + e_acc + bb_ref[l])                  # outer torch.tanh
        jk = x if l == 0 else jnp.maximum(jk, x)                 # JumpingKnowledge(mode='max')

    # ---- global pools over interface nodes ----
    pm = pool_ref[...]                                           # (2G, N): [member ; member/count]
    member = pm[:G]                                              # (G, N)
    sp_mp = jnp.dot(pm, jk, preferred_element_type=jnp.float32)  # add-pool & mean-pool in one matmul
    sum_pool = sp_mp[:G]
    mean_pool = sp_mp[G:]

    masked = jnp.where(member[:, :, None] > 0, jk[None, :, :], NEG)
    max_pool = jnp.max(masked, axis=1)                           # global_max_pool (G, H)

    # TODO(synk): GlobalSelfAttention is not defined in the reference source; implemented
    # as a learned-gate softmax attention pool per graph.
    score = jnp.dot(jk, gate_ref[...], preferred_element_type=jnp.float32)      # (N, 1)
    s = jnp.where(member > 0, score.T, NEG)                                      # (G, N)
    se = jnp.exp(s - jnp.max(s, axis=1, keepdims=True))
    attw = se * pl.reciprocal(jnp.sum(se, axis=1, keepdims=True), approx=True)
    att_pool = jnp.dot(attw, jk, preferred_element_type=jnp.float32)             # (G, H)

    # pool_jump = cat([add, mean, self_att, max]) -> lane-dense (G, 4H = 128)
    pooled = jnp.concatenate([sum_pool, mean_pool, att_pool, max_pool], axis=1)
    # lin1 / tanh / (dropout=identity) / lin2, weights packed lane-dense in tw/tb
    h = jnp.tanh(jnp.dot(pooled, tw_ref[0], preferred_element_type=jnp.float32) + tb_ref[0])
    o_ref[...] = jnp.dot(h, tw_ref[1], preferred_element_type=jnp.float32) + tb_ref[1]


# ---------------------------------------------------------------------------
# Wrapper: densified inputs -> packed / fused kernel arguments -> pallas_call
# ---------------------------------------------------------------------------
def gate_net_forward(x0, adj, ea, member, conv_params, gate, W1, b1, W2, b2):
    N = x0.shape[0]
    G = member.shape[0]
    A = ea.shape[0]
    L = len(conv_params)
    H = conv_params[0]["W_l"].shape[1]
    OUT_PAD = 128
    # tail packing (lin1/lin2 into one (2, 4H, 128) slab) assumes 4H == 128, 2H <= 128
    assert 4 * H == OUT_PAD and 2 * H <= OUT_PAD

    NEG = jnp.float32(-1e30)
    # additive softmax mask replaces adj inside the kernel
    mask_add = jnp.where(adj > 0, jnp.float32(0.0), NEG)                      # (N, N) f32
    # ea_flat[i, a*N + j] = ea[a, i, j]; bf16 (MXU-operand only)
    ea_flat = jnp.transpose(ea, (1, 0, 2)).reshape(N, A * N).astype(jnp.bfloat16)

    # fused projection: [W_l | W_l@att_l^T | W_l@att_r^T]  so  x @ Wp -> (xl, alpha_l, alpha_r)
    def fuse(p):
        wal = jnp.dot(p["W_l"], p["att_l"].T)
        war = jnp.dot(p["W_l"], p["att_r"].T)
        return jnp.concatenate([p["W_l"], wal, war], axis=1)                  # (Fin, H+2)

    wp0 = fuse(conv_params[0]).astype(jnp.bfloat16)                           # (Fin, H+2)
    if L > 1:
        wps = jnp.stack([fuse(p) for p in conv_params[1:]]).astype(jnp.bfloat16)   # (L-1, H, H+2)
    else:
        wps = jnp.zeros((1, H, H + 2), jnp.bfloat16)                          # unused dummy
    # We_exp[l, a*N + j, h] = W_e[l][a, h]  (selector fused into the edge-encoder weight)
    we_exp = jnp.stack([jnp.repeat(p["W_e"], N, axis=0) for p in conv_params]
                       ).astype(jnp.bfloat16)                                 # (L, A*N, H)
    bb = jnp.stack([p["b_e"] + p["bias"] for p in conv_params])               # (L, 1, H) f32

    # sum-pool + mean-pool matrices stacked: mean divide precomputed host-side (exact)
    count = jnp.maximum(jnp.sum(member, axis=1, keepdims=True), 1.0)
    pool_mat = jnp.concatenate([member, member / count], axis=0)              # (2G, N)

    # lin1 / lin2 packed into one lane-dense slab; final store is lane-dense (G, 128)
    tail_w = jnp.zeros((2, 4 * H, OUT_PAD), jnp.float32)
    tail_w = tail_w.at[0, :, :W1.shape[1]].set(W1)                            # (4H, 2H)
    tail_w = tail_w.at[1, :W2.shape[0], :W2.shape[1]].set(W2)                 # (2H, 1)
    tail_b = jnp.zeros((2, 1, OUT_PAD), jnp.float32)
    tail_b = tail_b.at[0, 0, :b1.shape[1]].set(b1[0])
    tail_b = tail_b.at[1, 0, :b2.shape[1]].set(b2[0])

    args = (x0, mask_add, ea_flat, wp0, wps, we_exp, bb, pool_mat, gate, tail_w, tail_b)
    kernel = functools.partial(_gate_net_kernel, num_layers=L, num_groups=G,
                               hidden=H, num_edge_attr=A, negative_slope=0.2)
    out = pl.pallas_call(
        kernel,
        out_shape=jax.ShapeDtypeStruct((G, OUT_PAD), jnp.float32),
        grid=(1,),
        in_specs=[_full_spec(a.shape) for a in args],
        out_specs=_full_spec((G, OUT_PAD)),
        compiler_params=pltpu.CompilerParams(dimension_semantics=("arbitrary",)),
    )(*args)
    return out[:, :W2.shape[1]]                                               # (G, 1)


# ---------------------------------------------------------------------------
# Parameter / input construction (glue).
# ---------------------------------------------------------------------------
def glorot(key, shape):
    fan_in, fan_out = shape[0], shape[-1]
    lim = float(np.sqrt(6.0 / (fan_in + fan_out)))
    return jax.random.uniform(key, shape, jnp.float32, -lim, lim)


if __name__ == "__main__":
    # model config: num_node_features=16, num_edge_attr=4, num_layers=3,
    # hidden=32, head=1, concat=True, graph_num=2, 8 nodes per graph.
    F_in, A, num_layers, hidden = 16, 4, 3, 32
    G, N_per = 2, 8
    N = G * N_per

    key = jax.random.PRNGKey(0)
    keys = jax.random.split(key, 32)
    kx, kea = keys[0], keys[1]

    # node features / edge attributes (forward takes reciprocal of edge_attr)
    x0 = jax.random.normal(kx, (N, F_in), jnp.float32)
    # ring edges (both directions) inside each graph, no self loops
    src, dst = [], []
    for g in range(G):
        base = g * N_per
        for n in range(N_per):
            s, t = base + n, base + (n + 1) % N_per
            src += [s, t]
            dst += [t, s]
    E = len(src)
    edge_attr = jax.random.uniform(kea, (E, A), jnp.float32, 0.5, 2.0)
    recip_edge_attr = np.asarray(1.0 / edge_attr)

    # densify graph: adj[target, source], ea[attr, target, source]
    adj_np = np.zeros((N, N), np.float32)
    ea_np = np.zeros((A, N, N), np.float32)
    for e in range(E):
        j, i = src[e], dst[e]                 # message j -> i
        adj_np[i, j] = 1.0
        ea_np[:, i, j] = recip_edge_attr[e]
    for n in range(N):                        # add_self_loops (edge_attr = 0)
        adj_np[n, n] = 1.0
    adj = jnp.asarray(adj_np)
    ea = jnp.asarray(ea_np)

    # interface_pos / batch: first 4 nodes of each graph are interface nodes
    iface = np.zeros((N,), np.float32)
    batch = np.zeros((N,), np.int64)
    for g in range(G):
        batch[g * N_per:(g + 1) * N_per] = g
        iface[g * N_per:g * N_per + 4] = 1.0
    member_np = np.zeros((G, N), np.float32)
    for n in range(N):
        member_np[batch[n], n] = iface[n]
    member = jnp.asarray(member_np)

    # GATEConv parameters (glorot weights, zero conv bias, as in reset_parameters)
    conv_params = []
    kidx = 2
    for l in range(num_layers):
        fin = F_in if l == 0 else hidden
        p = {
            "W_l":  glorot(keys[kidx + 0], (fin, hidden)),
            "att_l": glorot(keys[kidx + 1], (1, hidden)),
            "att_r": glorot(keys[kidx + 2], (1, hidden)),
            "W_e":  glorot(keys[kidx + 3], (A, hidden)),
            "b_e":  0.01 * jax.random.normal(keys[kidx + 4], (1, hidden), jnp.float32),
            "bias": jnp.zeros((1, hidden), jnp.float32),
        }
        conv_params.append(p)
        kidx += 5

    gate = glorot(keys[kidx + 0], (hidden, 1))
    W1 = glorot(keys[kidx + 1], (4 * hidden, 2 * hidden))
    b1 = jnp.zeros((1, 2 * hidden), jnp.float32)
    W2 = glorot(keys[kidx + 2], (2 * hidden, 1))
    b2 = jnp.zeros((1, 1), jnp.float32)

    # ---- fused forward: 3 conv layers + JK(max) + pools + MLP in ONE pallas_call ----
    scores = gate_net_forward(x0, adj, ea, member, conv_params, gate, W1, b1, W2, b2)
    jax.block_until_ready(scores)
    assert scores.shape == (G, 1)
    print("KERNEL_OK")
</pallas_src>

<mosaic_0001>
module attributes {stable_mosaic.version = 11 : i64} {
  func.func @_gate_net_kernel(%arg0: i32, %arg1: memref<16x16xf32, #tpu.memory_space<vmem>>, %arg2: memref<16x16xf32, #tpu.memory_space<vmem>>, %arg3: memref<16x64xbf16, #tpu.memory_space<vmem>>, %arg4: memref<16x34xbf16, #tpu.memory_space<vmem>>, %arg5: memref<2x32x34xbf16, #tpu.memory_space<vmem>>, %arg6: memref<3x64x32xbf16, #tpu.memory_space<vmem>>, %arg7: memref<3x1x32xf32, #tpu.memory_space<vmem>>, %arg8: memref<4x16xf32, #tpu.memory_space<vmem>>, %arg9: memref<32x1xf32, #tpu.memory_space<vmem>>, %arg10: memref<2x128x128xf32, #tpu.memory_space<vmem>>, %arg11: memref<2x1x128xf32, #tpu.memory_space<vmem>>, %arg12: memref<2x128xf32, #tpu.memory_space<vmem>>) attributes {dimension_semantics = [#tpu.dimension_semantics<arbitrary>], iteration_bounds = array<i64: 1>, scalar_prefetch = 0 : i64, scratch_operands = 0 : i64, tpu.core_type = #tpu.core_type<tc>, window_params = [{pipeline_mode = #tpu.pipeline_mode<synchronous>, transform_indices = @transform_0, window_bounds = array<i64: 16, 16>}, {pipeline_mode = #tpu.pipeline_mode<synchronous>, transform_indices = @transform_1, window_bounds = array<i64: 16, 16>}, {pipeline_mode = #tpu.pipeline_mode<synchronous>, transform_indices = @transform_2, window_bounds = array<i64: 16, 64>}, {pipeline_mode = #tpu.pipeline_mode<synchronous>, transform_indices = @transform_3, window_bounds = array<i64: 16, 34>}, {pipeline_mode = #tpu.pipeline_mode<synchronous>, transform_indices = @transform_4, window_bounds = array<i64: 2, 32, 34>}, {pipeline_mode = #tpu.pipeline_mode<synchronous>, transform_indices = @transform_5, window_bounds = array<i64: 3, 64, 32>}, {pipeline_mode = #tpu.pipeline_mode<synchronous>, transform_indices = @transform_6, window_bounds = array<i64: 3, 1, 32>}, {pipeline_mode = #tpu.pipeline_mode<synchronous>, transform_indices = @transform_7, window_bounds = array<i64: 4, 16>}, {pipeline_mode = #tpu.pipeline_mode<synchronous>, transform_indices = @transform_8, window_bounds = array<i64: 32, 1>}, {pipeline_mode = #tpu.pipeline_mode<synchronous>, transform_indices = @transform_9, window_bounds = array<i64: 2, 128, 128>}, {pipeline_mode = #tpu.pipeline_mode<synchronous>, transform_indices = @transform_10, window_bounds = array<i64: 2, 1, 128>}, {pipeline_mode = #tpu.pipeline_mode<synchronous>, transform_indices = @transform_11, window_bounds = array<i64: 2, 128>}]} {
    %c0 = arith.constant 0 : index
    %c0_0 = arith.constant 0 : index
    %0 = vector.load %arg2[%c0, %c0_0] : memref<16x16xf32, #tpu.memory_space<vmem>>, vector<16x16xf32>
    %c0_1 = arith.constant 0 : index
    %c0_2 = arith.constant 0 : index
    %1 = vector.load %arg1[%c0_1, %c0_2] : memref<16x16xf32, #tpu.memory_space<vmem>>, vector<16x16xf32>
    %c0_3 = arith.constant 0 : index
    %c0_4 = arith.constant 0 : index
    %2 = vector.load %arg4[%c0_3, %c0_4] : memref<16x34xbf16, #tpu.memory_space<vmem>>, vector<16x34xbf16>
    %3 = arith.truncf %1 : vector<16x16xf32> to vector<16x16xbf16>
    %cst = arith.constant dense<0.000000e+00> : vector<16x34xf32>
    %4 = tpu.matmul %3, %2, %cst {dimension_numbers = #tpu.dot_dimension_numbers<[1], [0], [0], [1], [0, 0, 1, 1], [], []>} : vector<16x16xbf16>, vector<16x34xbf16>, vector<16x34xf32> -> vector<16x34xf32>
    %5 = vector.extract_strided_slice %4 {offsets = [0, 0], sizes = [16, 32], strides = [1, 1]} : vector<16x34xf32> to vector<16x32xf32>
    %6 = vector.extract_strided_slice %4 {offsets = [0, 32], sizes = [16, 1], strides = [1, 1]} : vector<16x34xf32> to vector<16x1xf32>
    %7 = vector.extract_strided_slice %4 {offsets = [0, 33], sizes = [16, 1], strides = [1, 1]} : vector<16x34xf32> to vector<16x1xf32>
    %8 = tpu.transpose %6, [1, 0] : vector<16x1xf32> -> vector<1x16xf32>
    %9 = vector.broadcast %7 : vector<16x1xf32> to vector<16x16xf32>
    %10 = vector.broadcast %8 : vector<1x16xf32> to vector<16x16xf32>
    %11 = arith.addf %9, %10 : vector<16x16xf32>
    %cst_5 = arith.constant 2.000000e-01 : f32
    %12 = vector.broadcast %cst_5 : f32 to vector<16x16xf32>
    %13 = arith.mulf %12, %11 : vector<16x16xf32>
    %14 = arith.maximumf %11, %13 : vector<16x16xf32>
    %15 = arith.addf %14, %0 : vector<16x16xf32>
    %cst_6 = arith.constant dense<0xFF800000> : vector<16xf32>
    %16 = vector.multi_reduction <maximumf>, %15, %cst_6 [1] : vector<16x16xf32> to vector<16xf32>
    %17 = vector.shape_cast %16 : vector<16xf32> to vector<16x1xf32>
    %18 = vector.broadcast %17 : vector<16x1xf32> to vector<16x16xf32>
    %19 = arith.subf %15, %18 : vector<16x16xf32>
    %20 = math.exp %19 : vector<16x16xf32>
    %cst_7 = arith.constant dense<0.000000e+00> : vector<16xf32>
    %21 = vector.multi_reduction <add>, %20, %cst_7 [1] : vector<16x16xf32> to vector<16xf32>
    %22 = vector.shape_cast %21 : vector<16xf32> to vector<16x1xf32>
    %23 = tpu.reciprocal %22 {approx = true} : vector<16x1xf32> -> vector<16x1xf32>
    %24 = vector.broadcast %23 : vector<16x1xf32> to vector<16x16xf32>
    %25 = arith.mulf %20, %24 : vector<16x16xf32>
    %26 = arith.truncf %25 : vector<16x16xf32> to vector<16x16xbf16>
    %27 = arith.truncf %5 : vector<16x32xf32> to vector<16x32xbf16>
    %cst_8 = arith.constant dense<0.000000e+00> : vector<16x32xf32>
    %28 = tpu.matmul %26, %27, %cst_8 {dimension_numbers = #tpu.dot_dimension_numbers<[1], [0], [0], [1], [0, 0, 1, 1], [], []>} : vector<16x16xbf16>, vector<16x32xbf16>, vector<16x32xf32> -> vector<16x32xf32>
    %29 = tpu.concatenate %26, %26, %26, %26 in 1 : vector<16x16xbf16>, vector<16x16xbf16>, vector<16x16xbf16>, vector<16x16xbf16> -> vector<16x64xbf16>
    %c0_9 = arith.constant 0 : index
    %c0_10 = arith.constant 0 : index
    %30 = vector.load %arg3[%c0_9, %c0_10] : memref<16x64xbf16, #tpu.memory_space<vmem>>, vector<16x64xbf16>
    %31 = arith.mulf %29, %30 : vector<16x64xbf16>
    %c0_11 = arith.constant 0 : index
    %c0_12 = arith.constant 0 : index
    %c0_13 = arith.constant 0 : index
    %32 = vector.load %arg6[%c0_11, %c0_12, %c0_13] : memref<3x64x32xbf16, #tpu.memory_space<vmem>>, vector<1x64x32xbf16>
    %33 = vector.shape_cast %32 : vector<1x64x32xbf16> to vector<64x32xbf16>
    %cst_14 = arith.constant dense<0.000000e+00> : vector<16x32xf32>
    %34 = tpu.matmul %31, %33, %cst_14 {dimension_numbers = #tpu.dot_dimension_numbers<[1], [0], [0], [1], [0, 0, 1, 1], [], []>} : vector<16x64xbf16>, vector<64x32xbf16>, vector<16x32xf32> -> vector<16x32xf32>
    %35 = arith.addf %28, %34 : vector<16x32xf32>
    %c0_15 = arith.constant 0 : index
    %c0_16 = arith.constant 0 : index
    %c0_17 = arith.constant 0 : index
    %36 = vector.load %arg7[%c0_15, %c0_16, %c0_17] : memref<3x1x32xf32, #tpu.memory_space<vmem>>, vector<1x1x32xf32>
    %37 = vector.shape_cast %36 : vector<1x1x32xf32> to vector<1x32xf32>
    %38 = vector.broadcast %37 : vector<1x32xf32> to vector<16x32xf32>
    %39 = arith.addf %35, %38 : vector<16x32xf32>
    %40 = math.tanh %39 : vector<16x32xf32>
    %c0_18 = arith.constant 0 : index
    %c0_19 = arith.constant 0 : index
    %c0_20 = arith.constant 0 : index
    %41 = vector.load %arg5[%c0_18, %c0_19, %c0_20] : memref<2x32x34xbf16, #tpu.memory_space<vmem>>, vector<1x32x34xbf16>
    %42 = vector.shape_cast %41 : vector<1x32x34xbf16> to vector<32x34xbf16>
    %43 = arith.truncf %40 : vector<16x32xf32> to vector<16x32xbf16>
    %cst_21 = arith.constant dense<0.000000e+00> : vector<16x34xf32>
    %44 = tpu.matmul %43, %42, %cst_21 {dimension_numbers = #tpu.dot_dimension_numbers<[1], [0], [0], [1], [0, 0, 1, 1], [], []>} : vector<16x32xbf16>, vector<32x34xbf16>, vector<16x34xf32> -> vector<16x34xf32>
    %45 = vector.extract_strided_slice %44 {offsets = [0, 0], sizes = [16, 32], strides = [1, 1]} : vector<16x34xf32> to vector<16x32xf32>
    %46 = vector.extract_strided_slice %44 {offsets = [0, 32], sizes = [16, 1], strides = [1, 1]} : vector<16x34xf32> to vector<16x1xf32>
    %47 = vector.extract_strided_slice %44 {offsets = [0, 33], sizes = [16, 1], strides = [1, 1]} : vector<16x34xf32> to vector<16x1xf32>
    %48 = tpu.transpose %46, [1, 0] : vector<16x1xf32> -> vector<1x16xf32>
    %49 = vector.broadcast %47 : vector<16x1xf32> to vector<16x16xf32>
    %50 = vector.broadcast %48 : vector<1x16xf32> to vector<16x16xf32>
    %51 = arith.addf %49, %50 : vector<16x16xf32>
    %cst_22 = arith.constant 2.000000e-01 : f32
    %52 = vector.broadcast %cst_22 : f32 to vector<16x16xf32>
    %53 = arith.mulf %52, %51 : vector<16x16xf32>
    %54 = arith.maximumf %51, %53 : vector<16x16xf32>
    %55 = arith.addf %54, %0 : vector<16x16xf32>
    %cst_23 = arith.constant dense<0xFF800000> : vector<16xf32>
    %56 = vector.multi_reduction <maximumf>, %55, %cst_23 [1] : vector<16x16xf32> to vector<16xf32>
    %57 = vector.shape_cast %56 : vector<16xf32> to vector<16x1xf32>
    %58 = vector.broadcast %57 : vector<16x1xf32> to vector<16x16xf32>
    %59 = arith.subf %55, %58 : vector<16x16xf32>
    %60 = math.exp %59 : vector<16x16xf32>
    %cst_24 = arith.constant dense<0.000000e+00> : vector<16xf32>
    %61 = vector.multi_reduction <add>, %60, %cst_24 [1] : vector<16x16xf32> to vector<16xf32>
    %62 = vector.shape_cast %61 : vector<16xf32> to vector<16x1xf32>
    %63 = tpu.reciprocal %62 {approx = true} : vector<16x1xf32> -> vector<16x1xf32>
    %64 = vector.broadcast %63 : vector<16x1xf32> to vector<16x16xf32>
    %65 = arith.mulf %60, %64 : vector<16x16xf32>
    %66 = arith.truncf %65 : vector<16x16xf32> to vector<16x16xbf16>
    %67 = arith.truncf %45 : vector<16x32xf32> to vector<16x32xbf16>
    %cst_25 = arith.constant dense<0.000000e+00> : vector<16x32xf32>
    %68 = tpu.matmul %66, %67, %cst_25 {dimension_numbers = #tpu.dot_dimension_numbers<[1], [0], [0], [1], [0, 0, 1, 1], [], []>} : vector<16x16xbf16>, vector<16x32xbf16>, vector<16x32xf32> -> vector<16x32xf32>
    %69 = tpu.concatenate %66, %66, %66, %66 in 1 : vector<16x16xbf16>, vector<16x16xbf16>, vector<16x16xbf16>, vector<16x16xbf16> -> vector<16x64xbf16>
    %c0_26 = arith.constant 0 : index
    %c0_27 = arith.constant 0 : index
    %70 = vector.load %arg3[%c0_26, %c0_27] : memref<16x64xbf16, #tpu.memory_space<vmem>>, vector<16x64xbf16>
    %71 = arith.mulf %69, %70 : vector<16x64xbf16>
    %c1 = arith.constant 1 : index
    %c0_28 = arith.constant 0 : index
    %c0_29 = arith.constant 0 : index
    %72 = vector.load %arg6[%c1, %c0_28, %c0_29] : memref<3x64x32xbf16, #tpu.memory_space<vmem>>, vector<1x64x32xbf16>
    %73 = vector.shape_cast %72 : vector<1x64x32xbf16> to vector<64x32xbf16>
    %cst_30 = arith.constant dense<0.000000e+00> : vector<16x32xf32>
    %74 = tpu.matmul %71, %73, %cst_30 {dimension_numbers = #tpu.dot_dimension_numbers<[1], [0], [0], [1], [0, 0, 1, 1], [], []>} : vector<16x64xbf16>, vector<64x32xbf16>, vector<16x32xf32> -> vector<16x32xf32>
    %75 = arith.addf %68, %74 : vector<16x32xf32>
    %c1_31 = arith.constant 1 : index
    %c0_32 = arith.constant 0 : index
    %c0_33 = arith.constant 0 : index
    %76 = vector.load %arg7[%c1_31, %c0_32, %c0_33] : memref<3x1x32xf32, #tpu.memory_space<vmem>>, vector<1x1x32xf32>
    %77 = vector.shape_cast %76 : vector<1x1x32xf32> to vector<1x32xf32>
    %78 = vector.broadcast %77 : vector<1x32xf32> to vector<16x32xf32>
    %79 = arith.addf %75, %78 : vector<16x32xf32>
    %80 = math.tanh %79 : vector<16x32xf32>
    %81 = arith.maximumf %40, %80 : vector<16x32xf32>
    %c1_34 = arith.constant 1 : index
    %c0_35 = arith.constant 0 : index
    %c0_36 = arith.constant 0 : index
    %82 = vector.load %arg5[%c1_34, %c0_35, %c0_36] : memref<2x32x34xbf16, #tpu.memory_space<vmem>>, vector<1x32x34xbf16>
    %83 = vector.shape_cast %82 : vector<1x32x34xbf16> to vector<32x34xbf16>
    %84 = arith.truncf %80 : vector<16x32xf32> to vector<16x32xbf16>
    %cst_37 = arith.constant dense<0.000000e+00> : vector<16x34xf32>
    %85 = tpu.matmul %84, %83, %cst_37 {dimension_numbers = #tpu.dot_dimension_numbers<[1], [0], [0], [1], [0, 0, 1, 1], [], []>} : vector<16x32xbf16>, vector<32x34xbf16>, vector<16x34xf32> -> vector<16x34xf32>
    %86 = vector.extract_strided_slice %85 {offsets = [0, 0], sizes = [16, 32], strides = [1, 1]} : vector<16x34xf32> to vector<16x32xf32>
    %87 = vector.extract_strided_slice %85 {offsets = [0, 32], sizes = [16, 1], strides = [1, 1]} : vector<16x34xf32> to vector<16x1xf32>
    %88 = vector.extract_strided_slice %85 {offsets = [0, 33], sizes = [16, 1], strides = [1, 1]} : vector<16x34xf32> to vector<16x1xf32>
    %89 = tpu.transpose %87, [1, 0] : vector<16x1xf32> -> vector<1x16xf32>
    %90 = vector.broadcast %88 : vector<16x1xf32> to vector<16x16xf32>
    %91 = vector.broadcast %89 : vector<1x16xf32> to vector<16x16xf32>
    %92 = arith.addf %90, %91 : vector<16x16xf32>
    %cst_38 = arith.constant 2.000000e-01 : f32
    %93 = vector.broadcast %cst_38 : f32 to vector<16x16xf32>
    %94 = arith.mulf %93, %92 : vector<16x16xf32>
    %95 = arith.maximumf %92, %94 : vector<16x16xf32>
    %96 = arith.addf %95, %0 : vector<16x16xf32>
    %cst_39 = arith.constant dense<0xFF800000> : vector<16xf32>
    %97 = vector.multi_reduction <maximumf>, %96, %cst_39 [1] : vector<16x16xf32> to vector<16xf32>
    %98 = vector.shape_cast %97 : vector<16xf32> to vector<16x1xf32>
    %99 = vector.broadcast %98 : vector<16x1xf32> to vector<16x16xf32>
    %100 = arith.subf %96, %99 : vector<16x16xf32>
    %101 = math.exp %100 : vector<16x16xf32>
    %cst_40 = arith.constant dense<0.000000e+00> : vector<16xf32>
    %102 = vector.multi_reduction <add>, %101, %cst_40 [1] : vector<16x16xf32> to vector<16xf32>
    %103 = vector.shape_cast %102 : vector<16xf32> to vector<16x1xf32>
    %104 = tpu.reciprocal %103 {approx = true} : vector<16x1xf32> -> vector<16x1xf32>
    %105 = vector.broadcast %104 : vector<16x1xf32> to vector<16x16xf32>
    %106 = arith.mulf %101, %105 : vector<16x16xf32>
    %107 = arith.truncf %106 : vector<16x16xf32> to vector<16x16xbf16>
    %108 = arith.truncf %86 : vector<16x32xf32> to vector<16x32xbf16>
    %cst_41 = arith.constant dense<0.000000e+00> : vector<16x32xf32>
    %109 = tpu.matmul %107, %108, %cst_41 {dimension_numbers = #tpu.dot_dimension_numbers<[1], [0], [0], [1], [0, 0, 1, 1], [], []>} : vector<16x16xbf16>, vector<16x32xbf16>, vector<16x32xf32> -> vector<16x32xf32>
    %110 = tpu.concatenate %107, %107, %107, %107 in 1 : vector<16x16xbf16>, vector<16x16xbf16>, vector<16x16xbf16>, vector<16x16xbf16> -> vector<16x64xbf16>
    %c0_42 = arith.constant 0 : index
    %c0_43 = arith.constant 0 : index
    %111 = vector.load %arg3[%c0_42, %c0_43] : memref<16x64xbf16, #tpu.memory_space<vmem>>, vector<16x64xbf16>
    %112 = arith.mulf %110, %111 : vector<16x64xbf16>
    %c2 = arith.constant 2 : index
    %c0_44 = arith.constant 0 : index
    %c0_45 = arith.constant 0 : index
    %113 = vector.load %arg6[%c2, %c0_44, %c0_45] : memref<3x64x32xbf16, #tpu.memory_space<vmem>>, vector<1x64x32xbf16>
    %114 = vector.shape_cast %113 : vector<1x64x32xbf16> to vector<64x32xbf16>
    %cst_46 = arith.constant dense<0.000000e+00> : vector<16x32xf32>
    %115 = tpu.matmul %112, %114, %cst_46 {dimension_numbers = #tpu.dot_dimension_numbers<[1], [0], [0], [1], [0, 0, 1, 1], [], []>} : vector<16x64xbf16>, vector<64x32xbf16>, vector<16x32xf32> -> vector<16x32xf32>
    %116 = arith.addf %109, %115 : vector<16x32xf32>
    %c2_47 = arith.constant 2 : index
    %c0_48 = arith.constant 0 : index
    %c0_49 = arith.constant 0 : index
    %117 = vector.load %arg7[%c2_47, %c0_48, %c0_49] : memref<3x1x32xf32, #tpu.memory_space<vmem>>, vector<1x1x32xf32>
    %118 = vector.shape_cast %117 : vector<1x1x32xf32> to vector<1x32xf32>
    %119 = vector.broadcast %118 : vector<1x32xf32> to vector<16x32xf32>
    %120 = arith.addf %116, %119 : vector<16x32xf32>
    %121 = math.tanh %120 : vector<16x32xf32>
    %122 = arith.maximumf %81, %121 : vector<16x32xf32>
    %c0_50 = arith.constant 0 : index
    %c0_51 = arith.constant 0 : index
    %123 = vector.load %arg8[%c0_50, %c0_51] : memref<4x16xf32, #tpu.memory_space<vmem>>, vector<4x16xf32>
    %124 = vector.extract_strided_slice %123 {offsets = [0, 0], sizes = [2, 16], strides = [1, 1]} : vector<4x16xf32> to vector<2x16xf32>
    %cst_52 = arith.constant dense<0.000000e+00> : vector<4x32xf32>
    %125 = tpu.matmul %123, %122, %cst_52 {dimension_numbers = #tpu.dot_dimension_numbers<[1], [0], [0], [1], [0, 0, 1, 1], [], []>} : vector<4x16xf32>, vector<16x32xf32>, vector<4x32xf32> -> vector<4x32xf32>
    %126 = vector.extract_strided_slice %125 {offsets = [0, 0], sizes = [2, 32], strides = [1, 1]} : vector<4x32xf32> to vector<2x32xf32>
    %127 = vector.extract_strided_slice %125 {offsets = [2, 0], sizes = [2, 32], strides = [1, 1]} : vector<4x32xf32> to vector<2x32xf32>
    %128 = vector.shape_cast %124 : vector<2x16xf32> to vector<2x16x1xf32>
    %cst_53 = arith.constant 0.000000e+00 : f32
    %129 = vector.broadcast %cst_53 : f32 to vector<2x16x1xf32>
    %130 = arith.cmpf ogt, %128, %129 : vector<2x16x1xf32>
    %131 = vector.shape_cast %122 : vector<16x32xf32> to vector<1x16x32xf32>
    %cst_54 = arith.constant -1.000000e+30 : f32
    %132 = vector.shape_cast %130 : vector<2x16x1xi1> to vector<2x16x1xi1>
    %133 = vector.broadcast %132 : vector<2x16x1xi1> to vector<2x16x32xi1>
    %134 = vector.shape_cast %131 : vector<1x16x32xf32> to vector<1x16x32xf32>
    %135 = vector.broadcast %134 : vector<1x16x32xf32> to vector<2x16x32xf32>
    %136 = vector.broadcast %cst_54 : f32 to vector<2x16x32xf32>
    %137 = arith.select %133, %135, %136 : vector<2x16x32xi1>, vector<2x16x32xf32>
    %cst_55 = arith.constant dense<0xFF800000> : vector<2x32xf32>
    %138 = vector.multi_reduction <maximumf>, %137, %cst_55 [1] : vector<2x16x32xf32> to vector<2x32xf32>
    %c0_56 = arith.constant 0 : index
    %c0_57 = arith.constant 0 : index
    %139 = vector.load %arg9[%c0_56, %c0_57] : memref<32x1xf32, #tpu.memory_space<vmem>>, vector<32x1xf32>
    %cst_58 = arith.constant dense<0.000000e+00> : vector<16x1xf32>
    %140 = tpu.matmul %122, %139, %cst_58 {dimension_numbers = #tpu.dot_dimension_numbers<[1], [0], [0], [1], [0, 0, 1, 1], [], []>} : vector<16x32xf32>, vector<32x1xf32>, vector<16x1xf32> -> vector<16x1xf32>
    %cst_59 = arith.constant 0.000000e+00 : f32
    %141 = vector.broadcast %cst_59 : f32 to vector<2x16xf32>
    %142 = arith.cmpf ogt, %124, %141 : vector<2x16xf32>
    %143 = tpu.transpose %140, [1, 0] : vector<16x1xf32> -> vector<1x16xf32>
    %cst_60 = arith.constant -1.000000e+30 : f32
    %144 = vector.shape_cast %143 : vector<1x16xf32> to vector<1x16xf32>
    %145 = vector.broadcast %144 : vector<1x16xf32> to vector<2x16xf32>
    %146 = vector.broadcast %cst_60 : f32 to vector<2x16xf32>
    %147 = arith.select %142, %145, %146 : vector<2x16xi1>, vector<2x16xf32>
    %cst_61 = arith.constant dense<0xFF800000> : vector<2xf32>
    %148 = vector.multi_reduction <maximumf>, %147, %cst_61 [1] : vector<2x16xf32> to vector<2xf32>
    %149 = vector.shape_cast %148 : vector<2xf32> to vector<2x1xf32>
    %150 = vector.broadcast %149 : vector<2x1xf32> to vector<2x16xf32>
    %151 = arith.subf %147, %150 : vector<2x16xf32>
    %152 = math.exp %151 : vector<2x16xf32>
    %cst_62 = arith.constant dense<0.000000e+00> : vector<2xf32>
    %153 = vector.multi_reduction <add>, %152, %cst_62 [1] : vector<2x16xf32> to vector<2xf32>
    %154 = vector.shape_cast %153 : vector<2xf32> to vector<2x1xf32>
    %155 = tpu.reciprocal %154 {approx = true} : vector<2x1xf32> -> vector<2x1xf32>
    %156 = vector.broadcast %155 : vector<2x1xf32> to vector<2x16xf32>
    %157 = arith.mulf %152, %156 : vector<2x16xf32>
    %cst_63 = arith.constant dense<0.000000e+00> : vector<2x32xf32>
    %158 = tpu.matmul %157, %122, %cst_63 {dimension_numbers = #tpu.dot_dimension_numbers<[1], [0], [0], [1], [0, 0, 1, 1], [], []>} : vector<2x16xf32>, vector<16x32xf32>, vector<2x32xf32> -> vector<2x32xf32>
    %159 = tpu.concatenate %126, %127, %158, %138 in 1 : vector<2x32xf32>, vector<2x32xf32>, vector<2x32xf32>, vector<2x32xf32> -> vector<2x128xf32>
    %c0_64 = arith.constant 0 : index
    %c0_65 = arith.constant 0 : index
    %c0_66 = arith.constant 0 : index
    %160 = vector.load %arg10[%c0_64, %c0_65, %c0_66] : memref<2x128x128xf32, #tpu.memory_space<vmem>>, vector<1x128x128xf32>
    %161 = vector.shape_cast %160 : vector<1x128x128xf32> to vector<128x128xf32>
    %cst_67 = arith.constant dense<0.000000e+00> : vector<2x128xf32>
    %162 = tpu.matmul %159, %161, %cst_67 {dimension_numbers = #tpu.dot_dimension_numbers<[1], [0], [0], [1], [0, 0, 1, 1], [], []>} : vector<2x128xf32>, vector<128x128xf32>, vector<2x128xf32> -> vector<2x128xf32>
    %c0_68 = arith.constant 0 : index
    %c0_69 = arith.constant 0 : index
    %c0_70 = arith.constant 0 : index
    %163 = vector.load %arg11[%c0_68, %c0_69, %c0_70] : memref<2x1x128xf32, #tpu.memory_space<vmem>>, vector<1x1x128xf32>
    %164 = vector.shape_cast %163 : vector<1x1x128xf32> to vector<1x128xf32>
    %165 = vector.broadcast %164 : vector<1x128xf32> to vector<2x128xf32>
    %166 = arith.addf %162, %165 : vector<2x128xf32>
    %167 = math.tanh %166 : vector<2x128xf32>
    %c1_71 = arith.constant 1 : index
    %c0_72 = arith.constant 0 : index
    %c0_73 = arith.constant 0 : index
    %168 = vector.load %arg10[%c1_71, %c0_72, %c0_73] : memref<2x128x128xf32, #tpu.memory_space<vmem>>, vector<1x128x128xf32>
    %169 = vector.shape_cast %168 : vector<1x128x128xf32> to vector<128x128xf32>
    %cst_74 = arith.constant dense<0.000000e+00> : vector<2x128xf32>
    %170 = tpu.matmul %167, %169, %cst_74 {dimension_numbers = #tpu.dot_dimension_numbers<[1], [0], [0], [1], [0, 0, 1, 1], [], []>} : vector<2x128xf32>, vector<128x128xf32>, vector<2x128xf32> -> vector<2x128xf32>
    %c1_75 = arith.constant 1 : index
    %c0_76 = arith.constant 0 : index
    %c0_77 = arith.constant 0 : index
    %171 = vector.load %arg11[%c1_75, %c0_76, %c0_77] : memref<2x1x128xf32, #tpu.memory_space<vmem>>, vector<1x1x128xf32>
    %172 = vector.shape_cast %171 : vector<1x1x128xf32> to vector<1x128xf32>
    %173 = vector.broadcast %172 : vector<1x128xf32> to vector<2x128xf32>
    %174 = arith.addf %170, %173 : vector<2x128xf32>
    %c0_78 = arith.constant 0 : index
    %c0_79 = arith.constant 0 : index
    %175 = vector.load %arg12[%c0_78, %c0_79] : memref<2x128xf32, #tpu.memory_space<vmem>>, vector<2x128xf32>
    tpu.vector_store %arg12[%c0_78, %c0_79], %174 {strides = array<i32>} : memref<2x128xf32, #tpu.memory_space<vmem>>, vector<2x128xf32>,
    return
  }
  func.func @transform_0(%arg0: i32) -> (i32, i32) {
    %c0_i32 = arith.constant 0 : i32
    %c0_i32_0 = arith.constant 0 : i32
    %c0_i32_1 = arith.constant 0 : i32
    return %c0_i32, %c0_i32_0 : i32, i32
  }
  func.func @transform_1(%arg0: i32) -> (i32, i32) {
    %c0_i32 = arith.constant 0 : i32
    %c0_i32_0 = arith.constant 0 : i32
    %c0_i32_1 = arith.constant 0 : i32
    return %c0_i32, %c0_i32_0 : i32, i32
  }
  func.func @transform_2(%arg0: i32) -> (i32, i32) {
    %c0_i32 = arith.constant 0 : i32
    %c0_i32_0 = arith.constant 0 : i32
    %c0_i32_1 = arith.constant 0 : i32
    return %c0_i32, %c0_i32_0 : i32, i32
  }
  func.func @transform_3(%arg0: i32) -> (i32, i32) {
    %c0_i32 = arith.constant 0 : i32
    %c0_i32_0 = arith.constant 0 : i32
    %c0_i32_1 = arith.constant 0 : i32
    return %c0_i32, %c0_i32_0 : i32, i32
  }
  func.func @transform_4(%arg0: i32) -> (i32, i32, i32) {
    %c0_i32 = arith.constant 0 : i32
    %c0_i32_0 = arith.constant 0 : i32
    %c0_i32_1 = arith.constant 0 : i32
    %c0_i32_2 = arith.constant 0 : i32
    return %c0_i32, %c0_i32_0, %c0_i32_1 : i32, i32, i32
  }
  func.func @transform_5(%arg0: i32) -> (i32, i32, i32) {
    %c0_i32 = arith.constant 0 : i32
    %c0_i32_0 = arith.constant 0 : i32
    %c0_i32_1 = arith.constant 0 : i32
    %c0_i32_2 = arith.constant 0 : i32
    return %c0_i32, %c0_i32_0, %c0_i32_1 : i32, i32, i32
  }
  func.func @transform_6(%arg0: i32) -> (i32, i32, i32) {
    %c0_i32 = arith.constant 0 : i32
    %c0_i32_0 = arith.constant 0 : i32
    %c0_i32_1 = arith.constant 0 : i32
    %c0_i32_2 = arith.constant 0 : i32
    return %c0_i32, %c0_i32_0, %c0_i32_1 : i32, i32, i32
  }
  func.func @transform_7(%arg0: i32) -> (i32, i32) {
    %c0_i32 = arith.constant 0 : i32
    %c0_i32_0 = arith.constant 0 : i32
    %c0_i32_1 = arith.constant 0 : i32
    return %c0_i32, %c0_i32_0 : i32, i32
  }
  func.func @transform_8(%arg0: i32) -> (i32, i32) {
    %c0_i32 = arith.constant 0 : i32
    %c0_i32_0 = arith.constant 0 : i32
    %c0_i32_1 = arith.constant 0 : i32
    return %c0_i32, %c0_i32_0 : i32, i32
  }
  func.func @transform_9(%arg0: i32) -> (i32, i32, i32) {
    %c0_i32 = arith.constant 0 : i32
    %c0_i32_0 = arith.constant 0 : i32
    %c0_i32_1 = arith.constant 0 : i32
    %c0_i32_2 = arith.constant 0 : i32
    return %c0_i32, %c0_i32_0, %c0_i32_1 : i32, i32, i32
  }
  func.func @transform_10(%arg0: i32) -> (i32, i32, i32) {
    %c0_i32 = arith.constant 0 : i32
    %c0_i32_0 = arith.constant 0 : i32
    %c0_i32_1 = arith.constant 0 : i32
    %c0_i32_2 = arith.constant 0 : i32
    return %c0_i32, %c0_i32_0, %c0_i32_1 : i32, i32, i32
  }
  func.func @transform_11(%arg0: i32) -> (i32, i32) {
    %c0_i32 = arith.constant 0 : i32
    %c0_i32_0 = arith.constant 0 : i32
    %c0_i32_1 = arith.constant 0 : i32
    return %c0_i32, %c0_i32_0 : i32, i32
  }
}

</mosaic_0001>

<bundles_post_ra>
// kernel: tpu_custom_call.1
= control target key start
LH: loop header
LB: loop body
LE: loop exit
PB: predicated region body
PF: predicated region fallthrough
CT: control target
= control target key end

     0   :  { %16 = vsyncpa [#allocation3], 0  ;;  %s2369_s0 = inlined_call_operand.vmem [shape: f32[16,16], index: 0, kind: input, shape index: {}]   ;;  %s2370_s1 = inlined_call_operand.vmem [shape: f32[16,16], index: 1, kind: input, shape index: {}]   ;;  %s2371_s2 = inlined_call_operand.vmem [shape: bf16[16,64], index: 2, kind: input, shape index: {}]   ;;  %s2372_s3 = inlined_call_operand.vmem [shape: bf16[16,34], index: 3, kind: input, shape index: {}]   ;;  %s2373_s4 = inlined_call_operand.vmem [shape: bf16[2,32,34], index: 4, kind: input, shape index: {}]   ;;  %s2374_s5 = inlined_call_operand.vmem [shape: bf16[3,64,32], index: 5, kind: input, shape index: {}]   ;;  %s2375_s6 = inlined_call_operand.vmem [shape: f32[3,1,32], index: 6, kind: input, shape index: {}]   ;;  %s2376_s7 = inlined_call_operand.vmem [shape: f32[4,16], index: 7, kind: input, shape index: {}]   ;;  %s2377_s8 = inlined_call_operand.vmem [shape: f32[32,1], index: 8, kind: input, shape index: {}]   ;;  %s2378_s9 = inlined_call_operand.hbm [shape: f32[2,128,128], index: 9, kind: input, shape index: {}]   ;;  %s2379_s10 = inlined_call_operand.vmem [shape: f32[2,1,128], index: 10, kind: input, shape index: {}]   ;;  %s2380_s11 = inlined_call_operand.hbm [shape: f32[2,128], index: 11, kind: output, shape index: {}]  }
   0x1   :  { %17 = vsyncpa [#allocation4], 0  ;;  %s1997_s17 = smov [#allocation2]   ;;  %s1949_s21 = scalar_lea.hbm %s2378_s9, 4096 }
   0x2   :  { %s41_s18 = sshll.u32 %s1997_s17, 4  ;;  %p1950_p0 = scmp.ne.s32.totalorder %s2378_s9, %s1949_s21  ;;  %s42_s18 = int_to_ptr.vmem [resolvable:$true] %s41_s18 }
   0x3   :  { %p1953_p1 = scmp.lt.u32.totalorder %s1949_s21, %s2378_s9 }
   0x5   :  { %p1955_p2 = pnand %p1953_p1, %p1950_p0 }
   0x7   :  { %1958 = shalt.err (!%p1955_p2)
}
   0x8   :  { %s1959_s26 = scalar_lea.vmem %s42_s18, 4096  ;;  %p1964_p4 = scmp.lt.s32.totalorder %s42_s18, %s42_s18 }
   0x9   :  { %p1960_p3 = scmp.ne.s32.totalorder %s42_s18, %s1959_s26  ;;  %p1965_p5 = scmp.lt.s32.totalorder %s1959_s26, %s1959_s26 }
   0xb   :  { %p1966_p6 = por %p1965_p5, %p1964_p4 }
   0xd   :  { %p1967_p7 = pnand %p1966_p6, %p1960_p3 }
   0xf   :  { %1970 = shalt.err (!%p1967_p7)
}
  0x10   :  { %s1998_s27 = smov 128   ;;  %s1999_s28 = smov 8  }
  0x11   :  { %47 = dma.hbm_to_vmem [thread:$0]  %s2378_s9, 4096, %s42_s18, [#allocation3], %s1998_s27, %s1998_s27, %s1999_s28  }
  0x12   :  { %1993 = dma.done.wait [#allocation3], 4096  }
  0x13   :  { %1994 = vsyncadd [#allocation3], 4294963200  ;;  %v2000_v0 = vmov 0.0   ;;  %vm2001_vm0 = vmmov 0   ;;  %v2002_v1 = vmov 33   ;;  %v1889_v2 = vld [vmem:[%s2372_s3] sm:$0xff]   ;;  %v160_v13 = vlaneseq }
  0x14   :  { %1641 = vmatprep.subr.bf16.mxu0 %v2000_v0  ;;  %1643 = vmatprep.mubr.msk.bf16.mxu0 %vm2001_vm0, %v2000_v0  ;;  %v56_v3 = vld [vmem:[%s2369_s0] sm:$0xff]  ;;  %v57_v4 = vld [vmem:[%s2369_s0 + $0x8] sm:$0xff]  ;;  %vm67_vm1 = vcmask 130048   ;;  %s2003_s3 = smov 96   ;;  %v1892_v46 = vld [vmem:[%s2374_s5 + $0x10] sm:$0xff]   ;;  %s2004_s27 = smov 16  }
  0x15   :  { %1887 = vset.pattern.permute.xlu1 %v2002_v1  ;;  %1647 = vmatprep.subr.bf16.mxu1 %v2000_v0  ;;  %v60_v5 = vpack.c.bf16 %v57_v4, %v56_v3  ;;  %v2104_v14 = vshrl.u32 %v160_v13, 7  ;;  %v2113_v24 = vld [vmem:[%s2370_s1 + $0x8] sm:$0xff]  ;;  %v2118_v25 = vld [vmem:[%s2370_s1] sm:$0xff]  ;;  %v1894_v48 = vld [vmem:[%s2374_s5 + $0x18] sm:$0xff]   ;;  %s2005_s28 = smov 32   ;;  %s2006_s29 = smov 48  }
  0x16   :  { %1655 = vmatprep.mubr.msk.bf16.mxu1 %vm2001_vm0, %v2000_v0  ;;  %1642 = vmatpush3.bf16.msra.mxu0 %v1889_v2  ;;  %v1890_v42 = vld [vmem:[%s2374_s5] sm:$0xff]   ;;  %v1891_v45 = vld [vmem:[%s2374_s5 + $0x8] sm:$0xff]   ;;  %vm206_vm2 = vcmask 261120   ;;  %vm209_vm3 = vcmask 392192   ;;  %vm254_vm4 = vcmask 523264   ;;  %vm1197_vm6 = vcmask 123904  }
  0x17   :  { %1659 = vmatprep.subr.bf16.mxu0 %v2000_v0  ;;  %v2107_v16 = vsub.s32 0, %v2104_v14  ;;  %1648 = vmatpush3.bf16.msra.mxu1 %v1890_v42  ;;  %v2151_v55 = vld [vmem:[%s2371_s2] sm:$0xff]   ;;  %v1896_v3 = vld [vmem:[%s2373_s4 + $0x8] sm:$0xff]   ;;  %vm1293_vm11 = vcmask 1041409   ;;  %vm1300_vm12 = vcmask 785408   ;;  %s2009_s25 = smov [#allocation5]  }
  0x18   :  { %1649 = vmatprep.subr.bf16.mxu1 %v2000_v0  ;;  %v1895_v2 = vld [vmem:[%s2373_s4] sm:$0xff]   ;;  %s1498_s26 = sshll.u32 %s2009_s25, 4  ;;  %s1499_s26 = int_to_ptr.vmem [resolvable:$true] %s1498_s26 }
  0x19   :  { %1644 = vmatmul.mubr.msk.bf16.vlgmr.msra.gmra.mrb[0].mxu0 %vm67_vm1, %v60_v5  ;;  %v1516_v5 = vld [vmem:[%s2375_s6] ss:$0 sm:$0xff]  ;;  %s1971_s30 = scalar_lea.vmem %s1499_s26, 32  ;;  %p1976_p9 = scmp.lt.s32.totalorder %s1499_s26, %s1499_s26 }
  0x1a   :  { %1661 = vmatprep.mubr.msk.bf16.mxu0 %vm2001_vm0, %v2000_v0  ;;  %p1972_p8 = scmp.ne.s32.totalorder %s1499_s26, %s1971_s30  ;;  %p1977_p10 = scmp.lt.s32.totalorder %s1971_s30, %s1971_s30 }
  0x1b   :  { %1650 = vmatpush3.bf16.msra.mxu1 %v1891_v45 }
  0x1c   :  { %1651 = vmatprep.subr.bf16.mxu1 %v2000_v0  ;;  %p1978_p11 = por %p1977_p10, %p1976_p9 }
  0x1e   :  { %p1979_p12 = pnand %p1978_p11, %p1972_p8 }
  0x1f   :  { %1652 = vmatpush3.bf16.msra.mxu1 %v1892_v46 }
  0x20   :  { %1653 = vmatprep.subr.bf16.mxu1 %v2000_v0 }
  0x23   :  { %1654 = vmatpush3.bf16.msra.mxu1 %v1894_v48 }
  0x24   :  { %1673 = vmatprep.subr.bf16.mxu1 %v2000_v0 }
  0xec   :  { %v105_v6 = vpop.f32.mrb[0].mxu0 }
  0xed   :  { %153 = vperm.xlu1 %1887, %v105_v6   ;;  %114 = vrot.lane.b32.xlu0 %v105_v6, %s2003_s3  ;;  %v1645_v7 = vpop.f32.mrb[1].mxu0 }
  0xee   :  { %v108_v8 = vpop.f32.mrb[2].mxu0 }
  0xef   :  { %v195_v9 = vpack.c.bf16 %v108_v8, %v105_v6  ;;  %v1646_v10 = vpop.f32.mrb[3].mxu0 }
  0xf1   :  { %157 = vperm.xlu1 %1887, %v108_v8   ;;  %116 = vrot.lane.b32.xlu0 %v108_v8, %s2003_s3 }
  0xf2   :  { %1660 = vmatpush3.bf16.msra.mxu0 %v195_v9 }
  0xf3   :  { %1665 = vmatprep.subr.bf16.mxu0 %v2000_v0 }
 0x15f   :  { %v115_v11 = vpop.permute.xlu0 %114 }
 0x160   :  { %120 = vxpose.xlu0.b32.start [1/2] (short) (narrow) %v115_v11, 8 }
 0x163   :  { %v117_v12 = vpop.permute.xlu0 %116 }
 0x164   :  { %121 = vxpose.xlu0.b32.end [2/2] (short) (narrow) %v117_v12, 8 }
 0x16c   :  { %v154_v15 = vpop.permute.xlu1 %153 }
 0x170   :  { %v158_v19 = vpop.permute.xlu1 %157 }
 0x18d   :  { %1888 = vset.pattern.permute.xlu0 %v2002_v1 }
 0x1e0   :  { %v136_v17 = vpop.trf.xlu0 }
 0x1e1   :  { %v163_v18 = vrot.slane %v136_v17, %v2107_v16 }
 0x1e3   :  { %v164_v20 = vadd.f32 %v163_v18, %v154_v15  ;;  %v165_v21 = vadd.f32 %v163_v18, %v158_v19 }
 0x1e5   :  { %v166_v22 = vmul.f32 0.2, %v164_v20  ;;  %v167_v23 = vmul.f32 0.2, %v165_v21 }
 0x1e7   :  { %v169_v26 = vmax.f32 %v165_v21, %v167_v23  ;;  %v168_v27 = vmax.f32 %v164_v20, %v166_v22 }
 0x1e9   :  { %v171_v28 = vadd.f32 %v169_v26, %v2113_v24  ;;  %v170_v29 = vadd.f32 %v168_v27, %v2118_v25 }
 0x1eb   :  { %v175_v30 = vsel %vm67_vm1, %v171_v28, -inf  ;;  %v172_v31 = vsel %vm67_vm1, %v170_v29, -inf }
 0x1ec   :  { %176 = vmax.xlane.f32.xlu0 %v175_v30  ;;  %173 = vmax.xlane.f32.xlu1 %v172_v31 }
 0x279   :  { %v177_v32 = vpop.xlane.xlu0 %176  ;;  %v174_v33 = vpop.xlane.xlu1 %173 }
 0x27a   :  { %v179_v34 = vsub.f32 %v171_v28, %v177_v32  ;;  %v178_v35 = vsub.f32 %v170_v29, %v174_v33 }
 0x27c   :  { %v180_v36 = vmul.f32 1.442695, %v178_v35  ;;  %v182_v37 = vmul.f32 1.442695, %v179_v34 }
 0x27e   :  { %1907 = vpow2.f32 %v180_v36 }
 0x27f   :  { %1909 = vpow2.f32 %v182_v37 }
 0x288   :  { %v1908_v38 = vpop.eup %1907 }
 0x289   :  { %v184_v39 = vsel %vm67_vm1, %v1908_v38, 0.0  ;;  %v1910_v40 = vpop.eup %1909 }
 0x28a   :  { %185 = vadd.xlane.f32.xlu1 %v184_v39  ;;  %v187_v41 = vsel %vm67_vm1, %v1910_v40, 0.0 }
 0x28e   :  { %188 = vadd.xlane.f32.xlu1 %v187_v41 }
 0x317   :  { %v186_v43 = vpop.xlane.xlu1 %185 }
 0x318   :  { %1911 = vrcp.f32 %v186_v43 }
 0x31b   :  { %v189_v44 = vpop.xlane.xlu1 %188 }
 0x31c   :  { %1913 = vrcp.f32 %v189_v44 }
 0x322   :  { %v1912_v47 = vpop.eup %1911 }
 0x323   :  { %v192_v50 = vmul.f32 %v1912_v47, %v1908_v38 }
 0x326   :  { %v1914_v49 = vpop.eup %1913 }
 0x327   :  { %v193_v51 = vmul.f32 %v1914_v49, %v1910_v40 }
 0x329   :  { %v194_v52 = vpack.c.bf16 %v193_v51, %v192_v50  ;;  %v1897_v51 = vld [vmem:[%s2374_s5 + $0x20] sm:$0xff]  }
 0x32b   :  { %197 = vrot.lane.b32.xlu1 %v194_v52, %s2004_s27  ;;  %1662 = vmatmul.mubr.msk.bf16.vlgmr.msra.gmra.mrb[4].mxu0 %vm67_vm1, %v194_v52 }
 0x32c   :  { %1669 = vmatprep.mubr.msk.bf16.mxu0 %vm2001_vm0, %v2000_v0  ;;  %1666 = vmatpush3.bf16.msra.mxu0 %v1895_v2 }
 0x32d   :  { %1667 = vmatprep.subr.bf16.mxu0 %v2000_v0 }
 0x32f   :  { %199 = vrot.lane.b32.xlu1 %v194_v52, %s2005_s28 }
 0x330   :  { %1668 = vmatpush3.bf16.msra.mxu0 %v1896_v3 }
 0x331   :  { %1685 = vmatprep.subr.bf16.mxu0 %v2000_v0 }
 0x333   :  { %201 = vrot.lane.b32.xlu1 %v194_v52, %s2006_s29 }
 0x39d   :  { %v198_v53 = vpop.permute.xlu1 %197 }
 0x39e   :  { %v205_v56 = vsel %vm67_vm1, %v194_v52, %v198_v53  ;;  %v1898_v52 = vld [vmem:[%s2374_s5 + $0x28] sm:$0xff]  }
 0x3a1   :  { %v200_v54 = vpop.permute.xlu1 %199 }
 0x3a2   :  { %v208_v57 = vsel %vm206_vm2, %v205_v56, %v200_v54  ;;  %v1899_v56 = vld [vmem:[%s2374_s5 + $0x30] sm:$0xff]  }
 0x3a5   :  { %v202_v58 = vpop.permute.xlu1 %201 }
 0x3a6   :  { %v211_v59 = vsel %vm209_vm3, %v208_v57, %v202_v58  ;;  %v1900_v57 = vld [vmem:[%s2374_s5 + $0x38] sm:$0xff]  }
 0x3a7   :  { %v221_v60 = vmul.bf16 %v2151_v55, %v211_v59 }
 0x3a9   :  { %1656 = vmatmul.mubr.msk.bf16.vlgmr.msra.gmra.mrb[0].mxu1 %vm254_vm4, %v221_v60 }
 0x3aa   :  { %1681 = vmatprep.mubr.msk.bf16.mxu1 %vm2001_vm0, %v2000_v0  ;;  %1674 = vmatpush3.bf16.msra.mxu1 %v1897_v51 }
 0x3ab   :  { %1675 = vmatprep.subr.bf16.mxu1 %v2000_v0 }
 0x3ae   :  { %1676 = vmatpush3.bf16.msra.mxu1 %v1898_v52 }
 0x3af   :  { %1677 = vmatprep.subr.bf16.mxu1 %v2000_v0 }
 0x3b2   :  { %1678 = vmatpush3.bf16.msra.mxu1 %v1899_v56 }
 0x3b3   :  { %1679 = vmatprep.subr.bf16.mxu1 %v2000_v0 }
 0x3b6   :  { %1680 = vmatpush3.bf16.msra.mxu1 %v1900_v57 }
 0x3b7   :  { %1699 = vmatprep.subr.bf16.mxu1 %v2000_v0 }
 0x3fe   :  { %v335_v61 = vpop.f32.mrb[4].mxu0 }
 0x3ff   :  { %v1663_v62 = vpop.f32.mrb[5].mxu0 }
 0x400   :  { %v338_v63 = vpop.f32.mrb[6].mxu0 }
 0x401   :  { %v1664_v1 = vpop.f32.mrb[7].mxu0 }
 0x47c   :  { %v292_v4 = vpop.f32.mrb[0].mxu1 }
 0x47d   :  { %v336_v6 = vadd.f32 %v335_v61, %v292_v4  ;;  %v1657_v7 = vpop.f32.mrb[1].mxu1 }
 0x47e   :  { %v295_v8 = vpop.f32.mrb[2].mxu1 }
 0x47f   :  { %v349_v9 = vadd.f32 %v1516_v5, %v336_v6  ;;  %v339_v10 = vadd.f32 %v338_v63, %v295_v8  ;;  %v1658_v11 = vpop.f32.mrb[3].mxu1  ;;  %v1901_v8 = vld [vmem:[%s2373_s4 + $0x10] sm:$0xff]  }
 0x480   :  { %v1902_v11 = vld [vmem:[%s2373_s4 + $0x18] sm:$0xff]  }
 0x481   :  { %v350_v12 = vadd.f32 %v1516_v5, %v339_v10  ;;  %1915 = vtanh.f32 %v349_v9 }
 0x483   :  { %1917 = vtanh.f32 %v350_v12 }
 0x48b   :  { %v2171_v13 = vpop.eup %1915 }
 0x48d   :  { %v2173_v15 = vpop.eup %1917 }
 0x48e   :  { %v357_v17 = vpack.c.bf16 %v2173_v15, %v2171_v13 }
 0x490   :  { %1670 = vmatmul.mubr.msk.bf16.vlgmr.msra.gmra.mrb[8].mxu0 %vm206_vm2, %v357_v17 }
 0x491   :  { %1687 = vmatprep.mubr.msk.bf16.mxu0 %vm2001_vm0, %v2000_v0 }
 0x563   :  { %v407_v18 = vpop.f32.mrb[8].mxu0 }
 0x564   :  { %416 = vrot.lane.b32.xlu1 %v407_v18, %s2003_s3  ;;  %v1671_v19 = vpop.f32.mrb[9].mxu0 }
 0x565   :  { %v410_v20 = vpop.f32.mrb[10].mxu0 }
 0x566   :  { %v497_v21 = vpack.c.bf16 %v410_v20, %v407_v18  ;;  %459 = vperm.xlu0 %1888, %v410_v20   ;;  %v1672_v22 = vpop.f32.mrb[11].mxu0 }
 0x568   :  { %418 = vrot.lane.b32.xlu1 %v410_v20, %s2003_s3  ;;  %1686 = vmatpush3.bf16.msra.mxu0 %v497_v21 }
 0x569   :  { %1691 = vmatprep.subr.bf16.mxu0 %v2000_v0 }
 0x56c   :  { %455 = vperm.xlu1 %1887, %v407_v18   ;;  %v1535_v18 = vld [vmem:[%s2375_s6 + $0x1] ss:$0 sm:$0xff] }
 0x5d6   :  { %v417_v23 = vpop.permute.xlu1 %416 }
 0x5d7   :  { %422 = vxpose.xlu1.b32.start [1/2] (short) (narrow) %v417_v23, 8 }
 0x5da   :  { %v419_v26 = vpop.permute.xlu1 %418 }
 0x5db   :  { %423 = vxpose.xlu1.b32.end [2/2] (short) (narrow) %v419_v26, 8 }
 0x5e5   :  { %v460_v30 = vpop.permute.xlu0 %459 }
 0x5eb   :  { %v456_v27 = vpop.permute.xlu1 %455 }
 0x657   :  { %v438_v28 = vpop.trf.xlu1 }
 0x658   :  { %v465_v29 = vrot.slane %v438_v28, %v2107_v16 }
 0x65a   :  { %v466_v31 = vadd.f32 %v465_v29, %v456_v27  ;;  %v467_v32 = vadd.f32 %v465_v29, %v460_v30 }
 0x65c   :  { %v468_v33 = vmul.f32 0.2, %v466_v31  ;;  %v469_v34 = vmul.f32 0.2, %v467_v32 }
 0x65e   :  { %v471_v35 = vmax.f32 %v467_v32, %v469_v34  ;;  %v470_v36 = vmax.f32 %v466_v31, %v468_v33 }
 0x660   :  { %v473_v37 = vadd.f32 %v471_v35, %v2113_v24  ;;  %v472_v38 = vadd.f32 %v470_v36, %v2118_v25 }
 0x662   :  { %v477_v39 = vsel %vm67_vm1, %v473_v37, -inf  ;;  %v474_v40 = vsel %vm67_vm1, %v472_v38, -inf }
 0x663   :  { %478 = vmax.xlane.f32.xlu1 %v477_v39  ;;  %475 = vmax.xlane.f32.xlu0 %v474_v40 }
 0x6f0   :  { %v479_v41 = vpop.xlane.xlu1 %478  ;;  %v476_v42 = vpop.xlane.xlu0 %475 }
 0x6f1   :  { %v481_v43 = vsub.f32 %v473_v37, %v479_v41  ;;  %v480_v44 = vsub.f32 %v472_v38, %v476_v42 }
 0x6f3   :  { %v482_v45 = vmul.f32 1.442695, %v480_v44  ;;  %v484_v46 = vmul.f32 1.442695, %v481_v43 }
 0x6f5   :  { %1919 = vpow2.f32 %v482_v45 }
 0x6f6   :  { %1921 = vpow2.f32 %v484_v46 }
 0x6ff   :  { %v1920_v47 = vpop.eup %1919 }
 0x700   :  { %v486_v48 = vsel %vm67_vm1, %v1920_v47, 0.0  ;;  %v1922_v49 = vpop.eup %1921 }
 0x701   :  { %487 = vadd.xlane.f32.xlu0 %v486_v48  ;;  %v489_v50 = vsel %vm67_vm1, %v1922_v49, 0.0 }
 0x705   :  { %490 = vadd.xlane.f32.xlu0 %v489_v50 }
 0x78e   :  { %v488_v53 = vpop.xlane.xlu0 %487 }
 0x78f   :  { %1923 = vrcp.f32 %v488_v53 }
 0x792   :  { %v491_v54 = vpop.xlane.xlu0 %490 }
 0x793   :  { %1925 = vrcp.f32 %v491_v54 }
 0x799   :  { %v1924_v58 = vpop.eup %1923 }
 0x79a   :  { %v494_v60 = vmul.f32 %v1924_v58, %v1920_v47 }
 0x79d   :  { %v1926_v59 = vpop.eup %1925 }
 0x79e   :  { %v495_v61 = vmul.f32 %v1926_v59, %v1922_v49 }
 0x7a0   :  { %v496_v62 = vpack.c.bf16 %v495_v61, %v494_v60  ;;  %v1903_v61 = vld [vmem:[%s2374_s5 + $0x40] sm:$0xff]  }
 0x7a2   :  { %501 = vrot.lane.b32.xlu1 %v496_v62, %s2005_s28  ;;  %499 = vrot.lane.b32.xlu0 %v496_v62, %s2004_s27 }
 0x7a3   :  { %1688 = vmatmul.mubr.msk.bf16.vlgmr.msra.gmra.mrb[12].mxu0 %vm67_vm1, %v496_v62 }
 0x7a4   :  { %1695 = vmatprep.mubr.msk.bf16.mxu0 %vm2001_vm0, %v2000_v0  ;;  %1692 = vmatpush3.bf16.msra.mxu0 %v1901_v8 }
 0x7a5   :  { %1693 = vmatprep.subr.bf16.mxu0 %v2000_v0 }
 0x7a6   :  { %503 = vrot.lane.b32.xlu1 %v496_v62, %s2006_s29 }
 0x7a8   :  { %1694 = vmatpush3.bf16.msra.mxu0 %v1902_v11 }
 0x7a9   :  { %1711 = vmatprep.subr.bf16.mxu0 %v2000_v0 }
 0x814   :  { %v502_v63 = vpop.permute.xlu1 %501  ;;  %v500_v1 = vpop.permute.xlu0 %499 }
 0x815   :  { %v507_v2 = vsel %vm67_vm1, %v496_v62, %v500_v1  ;;  %v1904_v1 = vld [vmem:[%s2374_s5 + $0x48] sm:$0xff]  }
 0x816   :  { %v509_v4 = vsel %vm206_vm2, %v507_v2, %v502_v63  ;;  %v1905_v2 = vld [vmem:[%s2374_s5 + $0x50] sm:$0xff]  }
 0x818   :  { %v504_v3 = vpop.permute.xlu1 %503 }
 0x819   :  { %v511_v5 = vsel %vm209_vm3, %v509_v4, %v504_v3  ;;  %v1906_v4 = vld [vmem:[%s2374_s5 + $0x58] sm:$0xff]  }
 0x81a   :  { %v513_v6 = vmul.bf16 %v2151_v55, %v511_v5 }
 0x81c   :  { %1682 = vmatmul.mubr.msk.bf16.vlgmr.msra.gmra.mrb[4].mxu1 %vm254_vm4, %v513_v6 }
 0x81d   :  { %1707 = vmatprep.mubr.msk.bf16.mxu1 %vm2001_vm0, %v2000_v0  ;;  %1700 = vmatpush3.bf16.msra.mxu1 %v1903_v61 }
 0x81e   :  { %1701 = vmatprep.subr.bf16.mxu1 %v2000_v0 }
 0x821   :  { %1702 = vmatpush3.bf16.msra.mxu1 %v1904_v1 }
 0x822   :  { %1703 = vmatprep.subr.bf16.mxu1 %v2000_v0 }
 0x825   :  { %1704 = vmatpush3.bf16.msra.mxu1 %v1905_v2  ;;  %v1303_v2 = vld [vmem:[#allocation2 + $0x8] sm:$0xff] }
 0x826   :  { %1705 = vmatprep.subr.bf16.mxu1 %v2000_v0 }
 0x829   :  { %1706 = vmatpush3.bf16.msra.mxu1 %v1906_v4 }
 0x876   :  { %v627_v7 = vpop.f32.mrb[12].mxu0 }
 0x877   :  { %v1689_v9 = vpop.f32.mrb[13].mxu0 }
 0x878   :  { %v630_v10 = vpop.f32.mrb[14].mxu0 }
 0x879   :  { %v1690_v12 = vpop.f32.mrb[15].mxu0 }
 0x8ef   :  { %v584_v17 = vpop.f32.mrb[4].mxu1 }
 0x8f0   :  { %v628_v19 = vadd.f32 %v627_v7, %v584_v17  ;;  %v1683_v20 = vpop.f32.mrb[5].mxu1 }
 0x8f1   :  { %v587_v21 = vpop.f32.mrb[6].mxu1 }
 0x8f2   :  { %v642_v22 = vadd.f32 %v1535_v18, %v628_v19  ;;  %v631_v23 = vadd.f32 %v630_v10, %v587_v21  ;;  %v1684_v26 = vpop.f32.mrb[7].mxu1 }
 0x8f3   :  { %v1074_v26 = vld [vmem:[%s2377_s8] sm:$0xff] }
 0x8f4   :  { %v643_v27 = vadd.f32 %v1535_v18, %v631_v23  ;;  %1927 = vtanh.f32 %v642_v22 }
 0x8f6   :  { %1929 = vtanh.f32 %v643_v27  ;;  %v1075_v27 = vld [vmem:[%s2377_s8 + $0x8] sm:$0xff] }
 0x8fe   :  { %v2230_v28 = vpop.eup %1927 }
 0x900   :  { %v2232_v29 = vpop.eup %1929 }
 0x901   :  { %v653_v30 = vpack.c.bf16 %v2232_v29, %v2230_v28 }
 0x903   :  { %1696 = vmatmul.mubr.msk.bf16.vlgmr.msra.gmra.mrb[16].mxu0 %vm206_vm2, %v653_v30  ;;  %v1076_v30 = vld [vmem:[%s2377_s8 + $0x10] sm:$0xff] }
 0x904   :  { %1713 = vmatprep.mubr.msk.bf16.mxu0 %vm2001_vm0, %v2000_v0 }
 0x9d6   :  { %v703_v31 = vpop.f32.mrb[16].mxu0 }
 0x9d7   :  { %712 = vrot.lane.b32.xlu0 %v703_v31, %s2003_s3  ;;  %v1697_v32 = vpop.f32.mrb[17].mxu0 }
 0x9d8   :  { %v706_v33 = vpop.f32.mrb[18].mxu0 }
 0x9d9   :  { %v793_v34 = vpack.c.bf16 %v706_v33, %v703_v31  ;;  %714 = vrot.lane.b32.xlu1 %v706_v33, %s2003_s3  ;;  %v1698_v35 = vpop.f32.mrb[19].mxu0 }
 0x9da   :  { %v1558_v35 = vld [vmem:[%s2375_s6 + $0x2] ss:$0 sm:$0xff] }
 0x9db   :  { %751 = vperm.xlu0 %1888, %v703_v31   ;;  %1712 = vmatpush3.bf16.msra.mxu0 %v793_v34  ;;  %v1815_v31 = vpack.c.bf16 %v1075_v27, %v1074_v26 }
 0x9dd   :  { %755 = vperm.xlu1 %1887, %v706_v33   ;;  %1816 = vmatprep.subr.bf16.mxu1 %v1815_v31  ;;  %v2007_v33 = vmov 0.0|0.0  }
 0x9de   :  { %1812 = vmatprep.subr.bf16.mxu0 %v2007_v33 }
 0xa49   :  { %v713_v36 = vpop.permute.xlu0 %712 }
 0xa4a   :  { %718 = vxpose.xlu0.b32.start [1/2] (short) (narrow) %v713_v36, 8 }
 0xa4b   :  { %v715_v37 = vpop.permute.xlu1 %714 }
 0xa4e   :  { %719 = vxpose.xlu0.b32.end [2/2] (short) (narrow) %v715_v37, 8 }
 0xa5a   :  { %v752_v38 = vpop.permute.xlu0 %751 }
 0xa5c   :  { %v756_v41 = vpop.permute.xlu1 %755 }
 0xaca   :  { %v734_v39 = vpop.trf.xlu0 }
 0xacb   :  { %v761_v40 = vrot.slane %v734_v39, %v2107_v16 }
 0xacd   :  { %v762_v42 = vadd.f32 %v761_v40, %v752_v38  ;;  %v763_v43 = vadd.f32 %v761_v40, %v756_v41 }
 0xacf   :  { %v764_v44 = vmul.f32 0.2, %v762_v42  ;;  %v765_v45 = vmul.f32 0.2, %v763_v43 }
 0xad1   :  { %v766_v46 = vmax.f32 %v762_v42, %v764_v44  ;;  %v767_v47 = vmax.f32 %v763_v43, %v765_v45  ;;  %v646_v43 = vmax.f32 %v2171_v13, %v2230_v28  ;;  %v944_v13 = vld [vmem:[%s2376_s7] sm:$0xf]  ;;  %s2008_s7 = smov 64  }
 0xad2   :  { %vm1159_vm5 = vcmp.gt.f32.partialorder %v944_v13, 0.0 }
 0xad3   :  { %v768_v48 = vadd.f32 %v766_v46, %v2118_v25  ;;  %v769_v49 = vadd.f32 %v767_v47, %v2113_v24  ;;  %v647_v46 = vmax.f32 %v2173_v15, %v2232_v29  ;;  %v1031_v29 = vsub.s32 1, %v2104_v14 }
 0xad5   :  { %v770_v50 = vsel %vm67_vm1, %v768_v48, -inf  ;;  %v773_v51 = vsel %vm67_vm1, %v769_v49, -inf }
 0xad6   :  { %771 = vmax.xlane.f32.xlu1 %v770_v50  ;;  %774 = vmax.xlane.f32.xlu0 %v773_v51  ;;  %v1032_v50 = vrot.slane %v944_v13, %v1031_v29 }
 0xb63   :  { %v775_v52 = vpop.xlane.xlu0 %774  ;;  %v772_v53 = vpop.xlane.xlu1 %771 }
 0xb64   :  { %v777_v54 = vsub.f32 %v769_v49, %v775_v52  ;;  %v776_v56 = vsub.f32 %v768_v48, %v772_v53 }
 0xb66   :  { %v778_v57 = vmul.f32 1.442695, %v776_v56  ;;  %v780_v58 = vmul.f32 1.442695, %v777_v54 }
 0xb68   :  { %1931 = vpow2.f32 %v778_v57 }
 0xb69   :  { %1933 = vpow2.f32 %v780_v58 }
 0xb72   :  { %v1932_v59 = vpop.eup %1931 }
 0xb73   :  { %v782_v60 = vsel %vm67_vm1, %v1932_v59, 0.0  ;;  %v1934_v25 = vpop.eup %1933 }
 0xb74   :  { %783 = vadd.xlane.f32.xlu1 %v782_v60  ;;  %v785_v24 = vsel %vm67_vm1, %v1934_v25, 0.0 }
 0xb78   :  { %786 = vadd.xlane.f32.xlu1 %v785_v24 }
 0xc01   :  { %v784_v62 = vpop.xlane.xlu1 %783 }
 0xc02   :  { %1935 = vrcp.f32 %v784_v62 }
 0xc05   :  { %v787_v63 = vpop.xlane.xlu1 %786 }
 0xc06   :  { %1937 = vrcp.f32 %v787_v63 }
 0xc0c   :  { %v1936_v3 = vpop.eup %1935 }
 0xc0d   :  { %v790_v6 = vmul.f32 %v1936_v3, %v1932_v59  ;;  %v1304_v3 = vld [vmem:[#allocation2 + $0x10] sm:$0xff] }
 0xc10   :  { %v1938_v5 = vpop.eup %1937 }
 0xc11   :  { %v791_v7 = vmul.f32 %v1938_v5, %v1934_v25  ;;  %v1021_v25 = vrot.slane %v944_v13, %v2107_v16  ;;  %v1305_v5 = vld [vmem:[#allocation2 + $0x18] sm:$0xff] }
 0xc13   :  { %v792_v8 = vpack.c.bf16 %v791_v7, %v790_v6  ;;  %v1830_v6 = vpack.c.bf16 %v1305_v5, %v1304_v3  ;;  %v1306_v7 = vld [vmem:[#allocation2 + $0x20] sm:$0xff]  ;;  %v1406_v5 = vld [vmem:[#allocation2 + $0xc8] sm:$0xff] }
 0xc15   :  { %795 = vrot.lane.b32.xlu1 %v792_v8, %s2004_s27  ;;  %1714 = vmatmul.mubr.msk.bf16.vlgmr.msra.gmra.mrb[20].mxu0 %vm67_vm1, %v792_v8 }
 0xc16   :  { %1721 = vmatprep.mubr.msk.f32.mxu0 %vm2001_vm0, %v2000_v0 }
 0xc19   :  { %797 = vrot.lane.b32.xlu1 %v792_v8, %s2005_s28 }
 0xc1d   :  { %799 = vrot.lane.b32.xlu1 %v792_v8, %s2006_s29 }
 0xc87   :  { %v796_v9 = vpop.permute.xlu1 %795 }
 0xc88   :  { %v803_v11 = vsel %vm67_vm1, %v792_v8, %v796_v9  ;;  %v1307_v8 = vld [vmem:[#allocation2 + $0x28] sm:$0xff] }
 0xc89   :  { %v1833_v9 = vpack.c.bf16 %v1307_v8, %v1306_v7 }
 0xc8b   :  { %v798_v10 = vpop.permute.xlu1 %797 }
 0xc8c   :  { %v805_v12 = vsel %vm206_vm2, %v803_v11, %v798_v10  ;;  %v1308_v10 = vld [vmem:[#allocation2 + $0x30] sm:$0xff]  ;;  %v1309_v11 = vld [vmem:[#allocation2 + $0x38] sm:$0xff] }
 0xc8f   :  { %v800_v17 = vpop.permute.xlu1 %799 }
 0xc90   :  { %v807_v18 = vsel %vm209_vm3, %v805_v12, %v800_v17  ;;  %v1836_v12 = vpack.c.bf16 %v1309_v11, %v1308_v10  ;;  %v1311_v17 = vld [vmem:[#allocation2 + $0x48] sm:$0xff] }
 0xc91   :  { %v809_v19 = vmul.bf16 %v2151_v55, %v807_v18  ;;  %v1077_v55 = vld [vmem:[%s2377_s8 + $0x18] sm:$0xff] }
 0xc92   :  { %v1819_v32 = vpack.c.bf16 %v1077_v55, %v1076_v30 }
 0xc93   :  { %1708 = vmatmul.mubr.msk.bf16.vlgmr.msra.gmra.mrb[8].mxu1 %vm254_vm4, %v809_v19  ;;  %v1312_v19 = vld [vmem:[#allocation2 + $0x50] sm:$0xff] }
 0xc94   :  { %1818 = vmatpush3.bf16.msra.mxu1 %v1815_v31 }
 0xc95   :  { %1820 = vmatprep.subr.bf16.mxu1 %v1819_v32 }
 0xc98   :  { %1822 = vmatpush3.bf16.msra.mxu1 %v1819_v32 }
 0xc99   :  { %1850 = vmatprep.subr.bf16.mxu1 %v2007_v33 }
 0xce8   :  { %v923_v20 = vpop.f32.mrb[20].mxu0 }
 0xce9   :  { %v1715_v21 = vpop.f32.mrb[21].mxu0 }
 0xcea   :  { %v926_v22 = vpop.f32.mrb[22].mxu0 }
 0xceb   :  { %v1716_v23 = vpop.f32.mrb[23].mxu0 }
 0xcec   :  { %v1315_v23 = vld [vmem:[#allocation2 + $0x68] sm:$0xff] }
 0xd66   :  { %v880_v34 = vpop.f32.mrb[8].mxu1 }
 0xd67   :  { %v924_v36 = vadd.f32 %v923_v20, %v880_v34  ;;  %v1709_v37 = vpop.f32.mrb[9].mxu1  ;;  %v1313_v20 = vld [vmem:[#allocation2 + $0x58] sm:$0xff] }
 0xd68   :  { %v883_v38 = vpop.f32.mrb[10].mxu1  ;;  %v1842_v21 = vpack.c.bf16 %v1313_v20, %v1312_v19  ;;  %v1409_v19 = vld [vmem:[#allocation2 + $0xe0] sm:$0xff]  ;;  %v1410_v20 = vld [vmem:[#allocation2 + $0xe8] sm:$0xff] }
 0xd69   :  { %v938_v39 = vadd.f32 %v1558_v35, %v924_v36  ;;  %v927_v40 = vadd.f32 %v926_v22, %v883_v38  ;;  %v1710_v41 = vpop.f32.mrb[11].mxu1  ;;  %v1314_v22 = vld [vmem:[#allocation2 + $0x60] sm:$0xff] }
 0xd6a   :  { %v1845_v26 = vpack.c.bf16 %v1315_v23, %v1314_v22  ;;  %v1411_v22 = vld [vmem:[#allocation2 + $0xf0] sm:$0xff]  ;;  %v1412_v23 = vld [vmem:[#allocation2 + $0xf8] sm:$0xff] }
 0xd6b   :  { %1939 = vtanh.f32 %v938_v39  ;;  %v939_v42 = vadd.f32 %v1558_v35, %v927_v40 }
 0xd6d   :  { %1941 = vtanh.f32 %v939_v42 }
 0xd75   :  { %v1940_v44 = vpop.eup %1939 }
 0xd76   :  { %v2293_v45 = vmax.f32 %v646_v43, %v1940_v44 }
 0xd77   :  { %v1942_v47 = vpop.eup %1941 }
 0xd78   :  { %1732 = vmatprep.mubr.msk.f32.mxu1 %vm206_vm2, %v2293_v45  ;;  %v2299_v48 = vmax.f32 %v647_v46, %v1942_v47 }
 0xd7a   :  { %1733 = vmatmul.mubr.msk.f32.vlgmr.msra.gmra.mrb[12].mxu1 %vm206_vm2, %v2299_v48  ;;  %v1813_v49 = vpack.c.bf16 %v2299_v48, %v2293_v45 }
 0xd7b   :  { %1809 = vmatprep.mubr.msk.f32.mxu1 %vm2001_vm0, %v2000_v0 }
 0xd7c   :  { %1814 = vmatpush3.bf16.msra.mxu0 %v1813_v49 }
 0xd7d   :  { %1823 = vmatprep.subr.bf16.mxu0 %v2007_v33 }
 0xd7f   :  { %1722 = vmatmul.mubr.msk.f32.vlgmr.msra.gmra.mrb[24].mxu0 %vm67_vm1, %v944_v13  ;;  %v1317_v13 = vld [vmem:[#allocation2 + $0x78] sm:$0xff] }
 0xd80   :  { %1825 = vmatpush3.bf16.msra.mxu0 %v1813_v49  ;;  %1739 = vmatprep.mubr.msk.f32.mxu0 %vm2001_vm0, %v2000_v0  ;;  %v1316_v49 = vld [vmem:[#allocation2 + $0x70] sm:$0xff] }
 0xd81   :  { %1826 = vmatprep.subr.bf16.mxu0 %v2007_v33 }
 0xe4d   :  { %v1734_v15 = vpop.f32.mrb[12].mxu1 }
 0xe4e   :  { %v1150_v28 = vpop.f32.mrb[13].mxu1 }
 0xe4f   :  { %1160 = vxpose.xlu1.b32.start [1/2] (short) (narrow) %v1150_v28, 8 }
 0xe52   :  { %v2318_v14 = vpop.f32.mrb[24].mxu0 }
 0xe53   :  { %1161 = vxpose.xlu1.b32.end [2/2] (short) (narrow) %v1734_v15, 8  ;;  %v1283_v24 = vrot.slane %v2318_v14, 2  ;;  %v1723_v61 = vpop.f32.mrb[25].mxu0 }
 0xe71   :  { %1038 = vbcast.lane.b32.xlu1 %v1032_v50, 264 }
 0xecf   :  { %v1176_v51 = vpop.trf.xlu1 }
 0xed0   :  { %v1195_v52 = vrot.slane %v1176_v51, %v2107_v16  ;;  %v1302_v16 = vld [vmem:[#allocation2] sm:$0xff]  ;;  %v1399_v51 = vld [vmem:[#allocation2 + $0x90] sm:$0xff] }
 0xed1   :  { %v1827_v4 = vpack.c.bf16 %v1303_v2, %v1302_v16 }
 0xed2   :  { %v1196_v53 = vsel %vm1159_vm5, %v1195_v52, -1e+30 }
 0xed3   :  { %v1198_v54 = vsel %vm1197_vm6, %v1196_v53, -inf }
 0xed4   :  { %1199 = vmax.xlane.f32.xlu0 %v1198_v54  ;;  %v1400_v54 = vld [vmem:[#allocation2 + $0x98] sm:$0xff] }
 0xee3   :  { %v1039_v55 = vpop.permute.xlu1 %1038 }
 0xee4   :  { %vm1043_vm8 = vcmp.gt.f32.partialorder %v1039_v55, 0.0 }
 0xee5   :  { %v1055_v34 = vsel %vm1043_vm8, %v2299_v48, -1e+30 }
 0xee6   :  { %v1066_v38 = vsel %vm206_vm2, %v1055_v34, -inf }
 0xf61   :  { %v1200_v56 = vpop.xlane.xlu0 %1199 }
 0xf62   :  { %v1201_v57 = vsub.f32 %v1196_v53, %v1200_v56 }
 0xf64   :  { %v1202_v58 = vmul.f32 1.442695, %v1201_v57  ;;  %v1854_v57 = vpack.c.bf16 %v1400_v54, %v1399_v51 }
 0xf66   :  { %1943 = vpow2.f32 %v1202_v58  ;;  %v1401_v58 = vld [vmem:[#allocation2 + $0xa0] sm:$0xff] }
 0xf70   :  { %v1944_v59 = vpop.eup %1943 }
 0xf71   :  { %v1204_v60 = vsel %vm1197_vm6, %v1944_v59, 0.0 }
 0xf72   :  { %1205 = vadd.xlane.f32.xlu0 %v1204_v60 }
 0xf88   :  { %1023 = vbcast.lane.b32.xlu0 %v1021_v25, 256 }
 0xf8c   :  { %1027 = vbcast.lane.b32.xlu0 %v1021_v25, 264 }
 0xf90   :  { %1034 = vbcast.lane.b32.xlu0 %v1032_v50, 256  ;;  %v1398_v50 = vld [vmem:[#allocation2 + $0x88] sm:$0xff] }
 0xf94   :  { %1284 = vrot.lane.b32.xlu0 %v1283_v24, %s2005_s28 }
 0xfff   :  { %v1206_v62 = vpop.xlane.xlu0 %1205 }
0x1000   :  { %1945 = vrcp.f32 %v1206_v62 }
0x1003   :  { %v1024_v27 = vpop.permute.xlu0 %1023 }
0x1004   :  { %vm1040_vm10 = vcmp.gt.f32.partialorder %v1024_v27, 0.0 }
0x1005   :  { %v1052_v37 = vsel %vm1040_vm10, %v2293_v45, -1e+30 }
0x1006   :  { %v1056_v41 = vsel %vm206_vm2, %v1052_v37, -inf }
0x1007   :  { %v1028_v30 = vpop.permute.xlu0 %1027 }
0x1008   :  { %vm1041_vm9 = vcmp.gt.f32.partialorder %v1028_v30, 0.0 }
0x1009   :  { %v1053_v35 = vsel %vm1041_vm9, %v2299_v48, -1e+30  ;;  %v1848_v48 = vpack.c.bf16 %v1317_v13, %v1316_v49 }
0x100a   :  { %v1946_v63 = vpop.eup %1945  ;;  %v1057_v39 = vsel %vm206_vm2, %v1053_v35, -inf }
0x100b   :  { %v1208_v1 = vmul.f32 %v1946_v63, %v1944_v59  ;;  %v1035_v31 = vpop.permute.xlu0 %1034  ;;  %v1058_v42 = vmax.f32 %v1056_v41, %v1057_v39  ;;  %v1402_v59 = vld [vmem:[#allocation2 + $0xa8] sm:$0xff]  ;;  %v1403_v63 = vld [vmem:[#allocation2 + $0xb0] sm:$0xff] }
0x100c   :  { %vm1042_vm7 = vcmp.gt.f32.partialorder %v1035_v31, 0.0  ;;  %v1857_v61 = vpack.c.bf16 %v1402_v59, %v1401_v58 }
0x100d   :  { %1740 = vmatmul.mubr.msk.f32.vlgmr.msra.gmra.mrb[26].mxu0 %vm67_vm1, %v1208_v1  ;;  %v1054_v32 = vsel %vm1042_vm7, %v2293_v45, -1e+30  ;;  %v1059_v44 = vrot.slane %v1058_v42, 4  ;;  %v1397_v45 = vld [vmem:[#allocation2 + $0x80] sm:$0xff]  ;;  %v1404_v1 = vld [vmem:[#allocation2 + $0xb8] sm:$0xff] }
0x100e   :  { %1774 = vmatprep.mubr.msk.f32.mxu0 %vm2001_vm0, %v2000_v0  ;;  %1828 = vmatpush3.bf16.msra.mxu0 %v1827_v4  ;;  %v1310_v0 = vld [vmem:[#allocation2 + $0x40] sm:$0xff]  ;;  %v1065_v36 = vsel %vm206_vm2, %v1054_v32, -inf  ;;  %v1851_v53 = vpack.c.bf16 %v1398_v50, %v1397_v45  ;;  %v1860_v3 = vpack.c.bf16 %v1404_v1, %v1403_v63 }
0x100f   :  { %1829 = vmatprep.subr.bf16.mxu0 %v2007_v33  ;;  %v1839_v18 = vpack.c.bf16 %v1311_v17, %v1310_v0  ;;  %v1067_v40 = vmax.f32 %v1065_v36, %v1066_v38  ;;  %v1060_v47 = vmax.f32 %v1058_v42, %v1059_v44  ;;  %v1405_v4 = vld [vmem:[#allocation2 + $0xc0] sm:$0xff]  ;;  %v1285_v7 = vpop.permute.xlu0 %1284  ;;  %v1407_v0 = vld [vmem:[#allocation2 + $0xd0] sm:$0xff]  ;;  %v1408_v17 = vld [vmem:[#allocation2 + $0xd8] sm:$0xff] }
0x1010   :  { %1852 = vmatpush3.bf16.msra.mxu1 %v1851_v53  ;;  %v1565_v32 = vld [vmem:[%s2379_s10 + $0x1] ss:$0 sm:$0xff] }
0x1011   :  { %v1068_v43 = vrot.slane %v1067_v40, 4  ;;  %v1061_v28 = vrot.slane %v1060_v47, 2  ;;  %1853 = vmatprep.subr.bf16.mxu1 %v2007_v33 }
0x1012   :  { %1831 = vmatpush3.bf16.msra.mxu0 %v1830_v6  ;;  %v1863_v6 = vpack.c.bf16 %v1406_v5, %v1405_v4 }
0x1013   :  { %1832 = vmatprep.subr.bf16.mxu0 %v2007_v33  ;;  %v1069_v46 = vmax.f32 %v1067_v40, %v1068_v43  ;;  %v1062_v52 = vmax.f32 %v1060_v47, %v1061_v28 }
0x1014   :  { %1855 = vmatpush3.bf16.msra.mxu1 %v1854_v57 }
0x1015   :  { %v1070_v15 = vrot.slane %v1069_v46, 2  ;;  %v1063_v60 = vrot.slane %v1062_v52, 1  ;;  %1856 = vmatprep.subr.bf16.mxu1 %v2007_v33 }
0x1016   :  { %1834 = vmatpush3.bf16.msra.mxu0 %v1833_v9  ;;  %v1298_v9 = vsel %vm206_vm2, %v2318_v14, %v1285_v7  ;;  %v1563_v14 = vld [vmem:[%s2379_s10] ss:$0 sm:$0xff] }
0x1017   :  { %1835 = vmatprep.subr.bf16.mxu0 %v2007_v33  ;;  %v1071_v29 = vmax.f32 %v1069_v46, %v1070_v15  ;;  %v1064_v16 = vmax.f32 %v1062_v52, %v1063_v60 }
0x1018   :  { %1858 = vmatpush3.bf16.msra.mxu1 %v1857_v61 }
0x1019   :  { %v1072_v56 = vrot.slane %v1071_v29, 1  ;;  %1859 = vmatprep.subr.bf16.mxu1 %v2007_v33 }
0x101a   :  { %1837 = vmatpush3.bf16.msra.mxu0 %v1836_v12 }
0x101b   :  { %1838 = vmatprep.subr.bf16.mxu0 %v2007_v33  ;;  %v1073_v24 = vmax.f32 %v1071_v29, %v1072_v56 }
0x101c   :  { %1861 = vmatpush3.bf16.msra.mxu1 %v1860_v3 }
0x101d   :  { %v1294_v2 = vsel %vm1293_vm11, %v1073_v24, %v1064_v16  ;;  %1862 = vmatprep.subr.bf16.mxu1 %v2007_v33 }
0x101e   :  { %1840 = vmatpush3.bf16.msra.mxu0 %v1839_v18  ;;  %v1866_v18 = vpack.c.bf16 %v1408_v17, %v1407_v0 }
0x101f   :  { %1841 = vmatprep.subr.bf16.mxu0 %v2007_v33 }
0x1020   :  { %1864 = vmatpush3.bf16.msra.mxu1 %v1863_v6 }
0x1021   :  { %1865 = vmatprep.subr.bf16.mxu1 %v2007_v33 }
0x1022   :  { %1843 = vmatpush3.bf16.msra.mxu0 %v1842_v21  ;;  %v1869_v21 = vpack.c.bf16 %v1410_v20, %v1409_v19 }
0x1023   :  { %1844 = vmatprep.subr.bf16.mxu0 %v2007_v33 }
0x1024   :  { %1867 = vmatpush3.bf16.msra.mxu1 %v1866_v18 }
0x1025   :  { %1868 = vmatprep.subr.bf16.mxu1 %v2007_v33 }
0x1026   :  { %1846 = vmatpush3.bf16.msra.mxu0 %v1845_v26  ;;  %v1872_v26 = vpack.c.bf16 %v1412_v23, %v1411_v22 }
0x1027   :  { %1847 = vmatprep.subr.bf16.mxu0 %v2007_v33 }
0x1028   :  { %1870 = vmatpush3.bf16.msra.mxu1 %v1869_v21 }
0x1029   :  { %1871 = vmatprep.subr.bf16.mxu1 %v2007_v33 }
0x102a   :  { %1849 = vmatpush3.bf16.msra.mxu0 %v1848_v48 }
0x102c   :  { %1873 = vmatpush3.bf16.msra.mxu1 %v1872_v26 }
0x10e0   :  { %v1278_v25 = vpop.f32.mrb[26].mxu0 }
0x10e1   :  { %1288 = vrot.lane.b32.xlu0 %v1278_v25, %s2008_s7  ;;  %v1741_v62 = vpop.f32.mrb[27].mxu0 }
0x10e5   :  { %1295 = vrot.lane.b32.xlu0 %v1294_v2, %s2003_s3 }
0x1153   :  { %v1289_v8 = vpop.permute.xlu0 %1288 }
0x1154   :  { %v1299_v10 = vsel %vm254_vm4, %v1298_v9, %v1289_v8 }
0x1157   :  { %v1296_v11 = vpop.permute.xlu0 %1295 }
0x1158   :  { %v1301_v12 = vsel %vm1300_vm12, %v1299_v10, %v1296_v11 }
0x1159   :  { %1775 = vmatmul.mubr.f32.vlgmr.msra.gmra.mrb[28].mxu0 %v1301_v12 }
0x122c   :  { %v1391_v27 = vpop.f32.mrb[28].mxu0 }
0x122d   :  { %v1392_v30 = vadd.f32 %v1563_v14, %v1391_v27  ;;  %v1776_v31 = vpop.f32.mrb[29].mxu0 }
0x122f   :  { %1947 = vtanh.f32 %v1392_v30 }
0x1239   :  { %v1948_v55 = vpop.eup %1947 }
0x123a   :  { %1810 = vmatmul.mubr.f32.vlgmr.msra.gmra.mrb[14].mxu1 %v1948_v55 }
0x130d   :  { %v1487_v34 = vpop.f32.mrb[14].mxu1 }
0x130e   :  { %v1488_v35 = vadd.f32 %v1565_v32, %v1487_v34  ;;  %v1811_v33 = vpop.f32.mrb[15].mxu1 }
0x1310   :  { %1491 = vst [vmem:[#allocation5] sm:$0x3] %v1488_v35 }
0x1311   :  { %1982 = shalt.err (!%p1979_p12)
}
0x1312   :  { %s1983_s2 = scalar_lea.hbm %s2380_s11, 32 }
0x1313   :  { %p1984_p13 = scmp.ne.s32.totalorder %s2380_s11, %s1983_s2  ;;  %p1987_p0 = scmp.lt.u32.totalorder %s1983_s2, %s2380_s11 }
0x1315   :  { %p1989_p1 = pnand %p1987_p0, %p1984_p13 }
0x1317   :  { %1992 = shalt.err (!%p1989_p1)
}
0x1318   :  { %1501 = dma.vmem_to_hbm [thread:$0]  %s1499_s26, 32, %s2380_s11, [#allocation4]  }
0x1319   :  { %1995 = dma.done.wait [#allocation4], 32  }
0x131a   :  { %1996 = vsyncadd [#allocation4], 4294967264 }
0x131b   :  { %1505 = vsyncpa [#allocation3], 1 }
0x131c   :  { %1506 = vsyncpa [#allocation4], 1 }

</bundles_post_ra>
